<compile_context>
chip_gen: v7x
topology: tpu7x:2x2x1
jax: 0.10.0
libtpu: 0.0.40
codegen_flags: <defaults>
</compile_context>

<pallas_src>
import functools

import jax
import jax.numpy as jnp
from jax.experimental import pallas as pl
from jax.experimental.pallas import tpu as pltpu


# ---------------------------------------------------------------------------
# Kernel
# ---------------------------------------------------------------------------
def _bottleneck_kernel(x_ref, w1_ref, w2_ref, w3_ref, b1_ref, b2_ref, b3_ref,
                       out_ref, pad_ref, *, th):
    """One (batch, row-tile) step.

    x_ref   : (H+2, W, Cin)  bf16, H-padded by 1 zero row on each side,
              resident for the whole batch element.
    w1_ref  : (Cin, P)       bf16   (BN1 scale folded in)
    w2_ref  : (3, 3P, P)     bf16   (kh, kw*P+cin, cout), BN2 scale folded in
    w3_ref  : (P, C4)        bf16   (BN3 scale folded in)
    b*_ref  : (1, C)         f32    per-channel BN shifts
    out_ref : (TH, W, C4)    bf16
    pad_ref : (TH+2, W+2, P) bf16 scratch (W-padded conv2 input)
    """
    r = pl.program_id(1)
    nr = pl.num_programs(1)
    th2 = th + 2
    W, Cin = x_ref.shape[1], x_ref.shape[2]
    P = w1_ref.shape[1]
    C4 = w3_ref.shape[1]

    # ---- conv1 (1x1) on TH+2 rows (1-row halo each side) + shift + relu ---
    row0 = pl.multiple_of(r * th, th)
    x_halo = x_ref[pl.ds(row0, th2), :, :]                      # bf16 (TH+2,W,Cin)
    h1 = jnp.dot(x_halo.reshape(th2 * W, Cin), w1_ref[...],
                 preferred_element_type=jnp.float32)
    h1 = jnp.maximum(h1 + b1_ref[...], 0.0).reshape(th2, W, P)

    # Zero the halo rows that fall outside the image: they are conv2's
    # zero padding (conv1 of a padded zero row would give relu(b1) != 0).
    rows = jax.lax.broadcasted_iota(jnp.int32, (th2, 1, 1), 0)
    outside = ((rows == 0) & (r == 0)) | ((rows == th2 - 1) & (r == nr - 1))
    h1 = jnp.where(outside, 0.0, h1).astype(jnp.bfloat16)       # bf16 now

    # ---- conv2 (3x3, stride 1, pad 1): W-pad in-place into a persistent ---
    # bf16 scratch, build one (TH+2, W, 3P) kw-concatenated tap buffer, and
    # accumulate three K=3P matmuls over kh (leading-dim slices are free).
    zcol = jnp.zeros((th2, 1, P), jnp.bfloat16)
    pad_ref[:, 0:1, :] = zcol
    pad_ref[:, W + 1:W + 2, :] = zcol
    pad_ref[:, 1:W + 1, :] = h1

    col3 = jnp.concatenate(
        [pad_ref[:, 0:W, :], h1, pad_ref[:, 2:W + 2, :]], axis=-1)   # (TH+2,W,3P)

    h2 = jnp.dot(col3[0:th].reshape(th * W, 3 * P), w2_ref[0],
                 preferred_element_type=jnp.float32)
    h2 = h2 + jnp.dot(col3[1:th + 1].reshape(th * W, 3 * P), w2_ref[1],
                      preferred_element_type=jnp.float32)
    h2 = h2 + jnp.dot(col3[2:th + 2].reshape(th * W, 3 * P), w2_ref[2],
                      preferred_element_type=jnp.float32)
    h2 = jnp.maximum(h2 + b2_ref[...], 0.0).astype(jnp.bfloat16)     # (TH*W, P)

    # ---- conv3 (1x1) + shift + residual + relu -----------------------------
    h3 = jnp.dot(h2, w3_ref[...], preferred_element_type=jnp.float32)  # (TH*W,C4)
    xres = x_ref[pl.ds(row0 + 1, th), :, :].reshape(th * W, C4).astype(jnp.float32)
    out = jnp.maximum(h3 + b3_ref[...] + xres, 0.0)
    out_ref[...] = out.reshape(th, W, C4).astype(out_ref.dtype)


# ---------------------------------------------------------------------------
# Parameter preparation (BN folding, lane padding, bf16 cast)
# ---------------------------------------------------------------------------
def _fold_bn(gamma, beta, mean, var, eps=1e-5):
    scale = gamma / jnp.sqrt(var + eps)
    shift = beta - mean * scale
    return scale, shift


def prepare_bottleneck_params(w1_oihw, w2_oihw, w3_oihw, bn1, bn2, bn3, eps=1e-5):
    """Fold eval-mode BN scales into the conv weights, pad the intermediate
    channel dim P up to a multiple of 128 lanes, and cast matmul operands to
    bf16.  Returns kernel-ready (w1, w2, w3, b1, b2, b3)."""
    planes = w1_oihw.shape[0]
    s1, b1 = _fold_bn(*bn1, eps=eps)
    s2, b2 = _fold_bn(*bn2, eps=eps)
    s3, b3 = _fold_bn(*bn3, eps=eps)

    w1 = (w1_oihw[:, :, 0, 0] * s1[:, None]).T                          # (Cin, P)
    w2 = jnp.transpose(w2_oihw * s2[:, None, None, None], (2, 3, 1, 0))  # (kh,kw,I,O)
    w3 = (w3_oihw[:, :, 0, 0] * s3[:, None]).T                          # (P, C4)

    p_pad = max(128, ((planes + 127) // 128) * 128)
    if p_pad != planes:
        d = p_pad - planes
        w1 = jnp.pad(w1, ((0, 0), (0, d)))
        w2 = jnp.pad(w2, ((0, 0), (0, 0), (0, d), (0, d)))
        w3 = jnp.pad(w3, ((0, d), (0, 0)))
        b1 = jnp.pad(b1, (0, d))
        b2 = jnp.pad(b2, (0, d))

    w2 = w2.reshape(3, 3 * p_pad, p_pad)        # inner index = kw*P + cin

    return (w1.astype(jnp.bfloat16),
            w2.astype(jnp.bfloat16),
            w3.astype(jnp.bfloat16),
            b1[None, :].astype(jnp.float32),
            b2[None, :].astype(jnp.float32),
            b3[None, :].astype(jnp.float32))


# ---------------------------------------------------------------------------
# Wrapper
# ---------------------------------------------------------------------------
def _vmem_limit_bytes():
    """Generation-aware VMEM limit: ~3/4 of physical, capped at 100 MiB."""
    try:
        cap = int(pltpu.get_tpu_info().vmem_capacity_bytes)
        return min(cap * 3 // 4, 100 * 1024 * 1024)
    except Exception:
        return 48 * 1024 * 1024      # safe on every generation (incl. 64 MiB v7x)


def bottleneck_pallas(x_nhwc, params, *, row_tile=8):
    """x_nhwc: (N, H, W, Cin) bf16 with Cin == planes*4 (identity shortcut)."""
    w1, w2, w3, b1, b2, b3 = params
    N, H, W, C = x_nhwc.shape
    P = w1.shape[1]
    C4 = w3.shape[1]
    assert C == C4, "identity shortcut requires inplanes == planes*4"

    TH = row_tile if (H % row_tile == 0) else H

    # One-time halo pad along H (so every (TH+2)-row slice is in bounds).
    x_pad = jnp.pad(x_nhwc, ((0, 0), (1, 1), (0, 0), (0, 0)))

    kernel = functools.partial(_bottleneck_kernel, th=TH)
    # Grid-invariant weights/biases (index map constant -> DMA'd once).
    full = lambda a: pl.BlockSpec(a.shape, lambda n, r: (0,) * a.ndim)

    itemsize = lambda a: a.size * a.dtype.itemsize
    flops = 2 * N * H * W * (C * P + 9 * P * P + P * C4)
    bytes_accessed = (itemsize(x_pad) + N * H * W * C4 * x_nhwc.dtype.itemsize
                      + sum(itemsize(a) for a in (w1, w2, w3, b1, b2, b3)))

    return pl.pallas_call(
        kernel,
        out_shape=jax.ShapeDtypeStruct((N, H, W, C4), x_nhwc.dtype),
        grid_spec=pltpu.PrefetchScalarGridSpec(
            num_scalar_prefetch=0,
            grid=(N, H // TH),
            in_specs=[
                # Full (H-padded) image per batch element; block index only
                # changes with n, so it stays resident across row tiles.
                pl.BlockSpec((None, H + 2, W, C), lambda n, r: (n, 0, 0, 0)),
                full(w1), full(w2), full(w3),
                full(b1), full(b2), full(b3),
            ],
            out_specs=pl.BlockSpec((None, TH, W, C4), lambda n, r: (n, r, 0, 0)),
            scratch_shapes=[pltpu.VMEM((TH + 2, W + 2, P), jnp.bfloat16)],
        ),
        compiler_params=pltpu.CompilerParams(
            dimension_semantics=("parallel", "parallel"),
            vmem_limit_bytes=_vmem_limit_bytes()),
        cost_estimate=pl.CostEstimate(flops=flops, transcendentals=0,
                                      bytes_accessed=bytes_accessed),
    )(x_pad, w1, w2, w3, b1, b2, b3)


# ---------------------------------------------------------------------------
# Pure-JAX references
# ---------------------------------------------------------------------------
def _bn_eval_nchw(y, gamma, beta, mean, var, eps=1e-5):
    inv = gamma / jnp.sqrt(var + eps)
    return y * inv[None, :, None, None] + (beta - mean * inv)[None, :, None, None]


def bottleneck_ref_f32(x_nchw, w1, w2, w3, bn1, bn2, bn3):
    """Full-f32 PyTorch (eval-mode) semantics, NCHW."""
    conv = functools.partial(jax.lax.conv_general_dilated, window_strides=(1, 1),
                             dimension_numbers=("NCHW", "OIHW", "NCHW"))
    out = conv(x_nchw, w1, padding="VALID")
    out = jnp.maximum(_bn_eval_nchw(out, *bn1), 0.0)
    out = conv(out, w2, padding=((1, 1), (1, 1)))
    out = jnp.maximum(_bn_eval_nchw(out, *bn2), 0.0)
    out = conv(out, w3, padding="VALID")
    out = _bn_eval_nchw(out, *bn3)
    return jnp.maximum(out + x_nchw, 0.0)


def bottleneck_ref_matched(x_nhwc, params):
    """Reference reproducing the kernel's numerics (bf16 operands, f32 accum)."""
    w1, w2, w3, b1, b2, b3 = params
    P = w1.shape[1]
    w2_hwio = w2.reshape(3, 3, P, P)
    h1 = jnp.einsum("nhwc,cp->nhwp", x_nhwc, w1,
                    preferred_element_type=jnp.float32)
    h1 = jnp.maximum(h1 + b1[0], 0.0)
    h2 = jax.lax.conv_general_dilated(
        h1.astype(jnp.bfloat16), w2_hwio, (1, 1), ((1, 1), (1, 1)),
        dimension_numbers=("NHWC", "HWIO", "NHWC"),
        preferred_element_type=jnp.float32)
    h2 = jnp.maximum(h2 + b2[0], 0.0)
    h3 = jnp.einsum("nhwp,pc->nhwc", h2.astype(jnp.bfloat16), w3,
                    preferred_element_type=jnp.float32)
    return jnp.maximum(h3 + b3[0] + x_nhwc.astype(jnp.float32), 0.0)


# ---------------------------------------------------------------------------
# Test
# ---------------------------------------------------------------------------
def _run_case(key, N, planes, H, W):
    inplanes = planes * 4
    ks = jax.random.split(key, 8)

    w1 = jax.random.normal(ks[0], (planes, inplanes, 1, 1), jnp.float32) * (2.0 / inplanes) ** 0.5
    w2 = jax.random.normal(ks[1], (planes, planes, 3, 3), jnp.float32) * (2.0 / (9 * planes)) ** 0.5
    w3 = jax.random.normal(ks[2], (planes * 4, planes, 1, 1), jnp.float32) * (2.0 / planes) ** 0.5

    def make_bn(k, c):
        kg, kb, km, kv = jax.random.split(k, 4)
        return (1.0 + 0.1 * jax.random.normal(kg, (c,), jnp.float32),
                0.1 * jax.random.normal(kb, (c,), jnp.float32),
                0.1 * jax.random.normal(km, (c,), jnp.float32),
                1.0 + 0.1 * jax.random.uniform(kv, (c,), jnp.float32))

    bn1 = make_bn(ks[3], planes)
    bn2 = make_bn(ks[4], planes)
    bn3 = make_bn(ks[5], planes * 4)

    x_nchw = jax.random.normal(ks[6], (N, inplanes, H, W), jnp.float32)
    # One-time layout / dtype conversion (test setup only, not kernel hot path).
    x_nhwc = jnp.transpose(x_nchw, (0, 2, 3, 1)).astype(jnp.bfloat16)

    params = prepare_bottleneck_params(w1, w2, w3, bn1, bn2, bn3)
    out = jax.block_until_ready(bottleneck_pallas(x_nhwc, params))
    assert out.shape == (N, H, W, inplanes), out.shape
    assert out.dtype == jnp.bfloat16, out.dtype
    out_f32 = out.astype(jnp.float32)

    # Tight check against a reference matching the kernel's numerics.
    ref_m = jax.block_until_ready(bottleneck_ref_matched(x_nhwc, params))
    assert jnp.allclose(out_f32, ref_m, atol=3e-2, rtol=3e-2), (
        float(jnp.max(jnp.abs(out_f32 - ref_m))))

    # Loose semantic check against full-f32 PyTorch eval-mode semantics
    # (gap is only the intentional bf16 operand / output casts).
    x_f32_nchw = jnp.transpose(x_nhwc.astype(jnp.float32), (0, 3, 1, 2))
    ref32 = jnp.transpose(bottleneck_ref_f32(x_f32_nchw, w1, w2, w3, bn1, bn2, bn3),
                          (0, 2, 3, 1))
    rel_l2 = float(jnp.linalg.norm(out_f32 - ref32) / jnp.linalg.norm(ref32))
    assert rel_l2 < 0.05, rel_l2


if __name__ == "__main__":
    key_a, key_b = jax.random.split(jax.random.PRNGKey(0))
    # Small demo config (tiny channels; P is lane-padded to 128 internally).
    _run_case(key_a, N=2, planes=4, H=16, W=16)
    # Realistic ResNet-scale channels (lane-dense loads/stores, deep bf16
    # contractions, multi-row-tile pipeline).
    _run_case(key_b, N=2, planes=128, H=16, W=16)
    print("KERNEL_OK")
</pallas_src>

<mosaic_0001>
module attributes {stable_mosaic.version = 11 : i64} {
  func.func @_bottleneck_kernel(%arg0: i32, %arg1: i32, %arg2: memref<1x18x16x16xbf16, #tpu.memory_space<vmem>>, %arg3: memref<16x128xbf16, #tpu.memory_space<vmem>>, %arg4: memref<3x384x128xbf16, #tpu.memory_space<vmem>>, %arg5: memref<128x16xbf16, #tpu.memory_space<vmem>>, %arg6: memref<1x128xf32, #tpu.memory_space<vmem>>, %arg7: memref<1x128xf32, #tpu.memory_space<vmem>>, %arg8: memref<1x16xf32, #tpu.memory_space<vmem>>, %arg9: memref<1x8x16x16xbf16, #tpu.memory_space<vmem>>, %arg10: memref<10x18x128xbf16, #tpu.memory_space<vmem>>) attributes {dimension_semantics = [#tpu.dimension_semantics<parallel>, #tpu.dimension_semantics<parallel>], iteration_bounds = array<i64: 2, 2>, scalar_prefetch = 0 : i64, scratch_operands = 1 : i64, tpu.core_type = #tpu.core_type<tc>, window_params = [{transform_indices = @transform_0, window_bounds = array<i64: 1, 18, 16, 16>}, {pipeline_mode = #tpu.pipeline_mode<synchronous>, transform_indices = @transform_1, window_bounds = array<i64: 16, 128>}, {pipeline_mode = #tpu.pipeline_mode<synchronous>, transform_indices = @transform_2, window_bounds = array<i64: 3, 384, 128>}, {pipeline_mode = #tpu.pipeline_mode<synchronous>, transform_indices = @transform_3, window_bounds = array<i64: 128, 16>}, {pipeline_mode = #tpu.pipeline_mode<synchronous>, transform_indices = @transform_4, window_bounds = array<i64: 1, 128>}, {pipeline_mode = #tpu.pipeline_mode<synchronous>, transform_indices = @transform_5, window_bounds = array<i64: 1, 128>}, {pipeline_mode = #tpu.pipeline_mode<synchronous>, transform_indices = @transform_6, window_bounds = array<i64: 1, 16>}, {transform_indices = @transform_7, window_bounds = array<i64: 1, 8, 16, 16>}]} {
    %c8_i32 = arith.constant 8 : i32
    %0 = arith.muli %arg1, %c8_i32 : i32
    %1 = tpu.assume_multiple %0, 8 : i32
    %c0 = arith.constant 0 : index
    %2 = arith.index_cast %1 : i32 to index
    %c0_0 = arith.constant 0 : index
    %c0_1 = arith.constant 0 : index
    %3 = vector.load %arg2[%c0, %2, %c0_0, %c0_1] : memref<1x18x16x16xbf16, #tpu.memory_space<vmem>>, vector<1x10x16x16xbf16>
    %4 = vector.shape_cast %3 : vector<1x10x16x16xbf16> to vector<10x16x16xbf16>
    %5 = vector.shape_cast %4 : vector<10x16x16xbf16> to vector<160x16xbf16>
    %c0_2 = arith.constant 0 : index
    %c0_3 = arith.constant 0 : index
    %6 = vector.load %arg3[%c0_2, %c0_3] : memref<16x128xbf16, #tpu.memory_space<vmem>>, vector<16x128xbf16>
    %cst = arith.constant dense<0.000000e+00> : vector<160x128xf32>
    %7 = tpu.matmul %5, %6, %cst {dimension_numbers = #tpu.dot_dimension_numbers<[1], [0], [0], [1], [0, 0, 1, 1], [], []>} : vector<160x16xbf16>, vector<16x128xbf16>, vector<160x128xf32> -> vector<160x128xf32>
    %c0_4 = arith.constant 0 : index
    %c0_5 = arith.constant 0 : index
    %8 = vector.load %arg6[%c0_4, %c0_5] : memref<1x128xf32, #tpu.memory_space<vmem>>, vector<1x128xf32>
    %9 = vector.broadcast %8 : vector<1x128xf32> to vector<160x128xf32>
    %10 = arith.addf %7, %9 : vector<160x128xf32>
    %cst_6 = arith.constant 0.000000e+00 : f32
    %11 = vector.broadcast %cst_6 : f32 to vector<160x128xf32>
    %12 = arith.maximumf %10, %11 : vector<160x128xf32>
    %13 = vector.shape_cast %12 : vector<160x128xf32> to vector<10x16x128xf32>
    %14 = tpu.iota {dimensions = array<i32: 0>} : vector<10x1x1xi32>
    %c0_i32 = arith.constant 0 : i32
    %15 = vector.broadcast %c0_i32 : i32 to vector<10x1x1xi32>
    %16 = arith.cmpi eq, %14, %15 : vector<10x1x1xi32>
    %c0_i32_7 = arith.constant 0 : i32
    %17 = arith.cmpi eq, %arg1, %c0_i32_7 : i32
    %18 = vector.broadcast %17 : i1 to vector<10x1x1xi1>
    %19 = arith.andi %16, %18 : vector<10x1x1xi1>
    %c9_i32 = arith.constant 9 : i32
    %20 = vector.broadcast %c9_i32 : i32 to vector<10x1x1xi32>
    %21 = arith.cmpi eq, %14, %20 : vector<10x1x1xi32>
    %c1_i32 = arith.constant 1 : i32
    %22 = arith.cmpi eq, %arg1, %c1_i32 : i32
    %23 = vector.broadcast %22 : i1 to vector<10x1x1xi1>
    %24 = arith.andi %21, %23 : vector<10x1x1xi1>
    %25 = arith.ori %19, %24 : vector<10x1x1xi1>
    %cst_8 = arith.constant 0.000000e+00 : f32
    %26 = vector.shape_cast %25 : vector<10x1x1xi1> to vector<10x1x1xi1>
    %27 = vector.broadcast %26 : vector<10x1x1xi1> to vector<10x16x128xi1>
    %28 = vector.broadcast %cst_8 : f32 to vector<10x16x128xf32>
    %29 = arith.select %27, %28, %13 : vector<10x16x128xi1>, vector<10x16x128xf32>
    %30 = arith.truncf %29 : vector<10x16x128xf32> to vector<10x16x128xbf16>
    %cst_9 = arith.constant 0.000000e+00 : bf16
    %31 = vector.broadcast %cst_9 : bf16 to vector<10x1x128xbf16>
    %c0_10 = arith.constant 0 : index
    %c0_11 = arith.constant 0 : index
    %c0_12 = arith.constant 0 : index
    %32 = vector.load %arg10[%c0_10, %c0_11, %c0_12] : memref<10x18x128xbf16, #tpu.memory_space<vmem>>, vector<10x1x128xbf16>
    tpu.vector_store %arg10[%c0_10, %c0_11, %c0_12], %31 {strides = array<i32>} : memref<10x18x128xbf16, #tpu.memory_space<vmem>>, vector<10x1x128xbf16>,
    %c0_13 = arith.constant 0 : index
    %c17 = arith.constant 17 : index
    %c0_14 = arith.constant 0 : index
    %33 = vector.load %arg10[%c0_13, %c17, %c0_14] : memref<10x18x128xbf16, #tpu.memory_space<vmem>>, vector<10x1x128xbf16>
    tpu.vector_store %arg10[%c0_13, %c17, %c0_14], %31 {strides = array<i32>} : memref<10x18x128xbf16, #tpu.memory_space<vmem>>, vector<10x1x128xbf16>,
    %c0_15 = arith.constant 0 : index
    %c1 = arith.constant 1 : index
    %c0_16 = arith.constant 0 : index
    %34 = vector.load %arg10[%c0_15, %c1, %c0_16] : memref<10x18x128xbf16, #tpu.memory_space<vmem>>, vector<10x16x128xbf16>
    tpu.vector_store %arg10[%c0_15, %c1, %c0_16], %30 {strides = array<i32>} : memref<10x18x128xbf16, #tpu.memory_space<vmem>>, vector<10x16x128xbf16>,
    %c0_17 = arith.constant 0 : index
    %c0_18 = arith.constant 0 : index
    %c0_19 = arith.constant 0 : index
    %35 = vector.load %arg10[%c0_17, %c0_18, %c0_19] : memref<10x18x128xbf16, #tpu.memory_space<vmem>>, vector<10x16x128xbf16>
    %c0_20 = arith.constant 0 : index
    %c2 = arith.constant 2 : index
    %c0_21 = arith.constant 0 : index
    %36 = vector.load %arg10[%c0_20, %c2, %c0_21] : memref<10x18x128xbf16, #tpu.memory_space<vmem>>, vector<10x16x128xbf16>
    %37 = tpu.concatenate %35, %30, %36 in 2 : vector<10x16x128xbf16>, vector<10x16x128xbf16>, vector<10x16x128xbf16> -> vector<10x16x384xbf16>
    %38 = vector.extract_strided_slice %37 {offsets = [0, 0, 0], sizes = [8, 16, 384], strides = [1, 1, 1]} : vector<10x16x384xbf16> to vector<8x16x384xbf16>
    %39 = vector.shape_cast %38 : vector<8x16x384xbf16> to vector<128x384xbf16>
    %c0_22 = arith.constant 0 : index
    %c0_23 = arith.constant 0 : index
    %c0_24 = arith.constant 0 : index
    %40 = vector.load %arg4[%c0_22, %c0_23, %c0_24] : memref<3x384x128xbf16, #tpu.memory_space<vmem>>, vector<1x384x128xbf16>
    %41 = vector.shape_cast %40 : vector<1x384x128xbf16> to vector<384x128xbf16>
    %cst_25 = arith.constant dense<0.000000e+00> : vector<128x128xf32>
    %42 = tpu.matmul %39, %41, %cst_25 {dimension_numbers = #tpu.dot_dimension_numbers<[1], [0], [0], [1], [0, 0, 1, 1], [], []>} : vector<128x384xbf16>, vector<384x128xbf16>, vector<128x128xf32> -> vector<128x128xf32>
    %43 = vector.extract_strided_slice %37 {offsets = [1, 0, 0], sizes = [8, 16, 384], strides = [1, 1, 1]} : vector<10x16x384xbf16> to vector<8x16x384xbf16>
    %44 = vector.shape_cast %43 : vector<8x16x384xbf16> to vector<128x384xbf16>
    %c1_26 = arith.constant 1 : index
    %c0_27 = arith.constant 0 : index
    %c0_28 = arith.constant 0 : index
    %45 = vector.load %arg4[%c1_26, %c0_27, %c0_28] : memref<3x384x128xbf16, #tpu.memory_space<vmem>>, vector<1x384x128xbf16>
    %46 = vector.shape_cast %45 : vector<1x384x128xbf16> to vector<384x128xbf16>
    %cst_29 = arith.constant dense<0.000000e+00> : vector<128x128xf32>
    %47 = tpu.matmul %44, %46, %cst_29 {dimension_numbers = #tpu.dot_dimension_numbers<[1], [0], [0], [1], [0, 0, 1, 1], [], []>} : vector<128x384xbf16>, vector<384x128xbf16>, vector<128x128xf32> -> vector<128x128xf32>
    %48 = arith.addf %42, %47 : vector<128x128xf32>
    %49 = vector.extract_strided_slice %37 {offsets = [2, 0, 0], sizes = [8, 16, 384], strides = [1, 1, 1]} : vector<10x16x384xbf16> to vector<8x16x384xbf16>
    %50 = vector.shape_cast %49 : vector<8x16x384xbf16> to vector<128x384xbf16>
    %c2_30 = arith.constant 2 : index
    %c0_31 = arith.constant 0 : index
    %c0_32 = arith.constant 0 : index
    %51 = vector.load %arg4[%c2_30, %c0_31, %c0_32] : memref<3x384x128xbf16, #tpu.memory_space<vmem>>, vector<1x384x128xbf16>
    %52 = vector.shape_cast %51 : vector<1x384x128xbf16> to vector<384x128xbf16>
    %cst_33 = arith.constant dense<0.000000e+00> : vector<128x128xf32>
    %53 = tpu.matmul %50, %52, %cst_33 {dimension_numbers = #tpu.dot_dimension_numbers<[1], [0], [0], [1], [0, 0, 1, 1], [], []>} : vector<128x384xbf16>, vector<384x128xbf16>, vector<128x128xf32> -> vector<128x128xf32>
    %54 = arith.addf %48, %53 : vector<128x128xf32>
    %c0_34 = arith.constant 0 : index
    %c0_35 = arith.constant 0 : index
    %55 = vector.load %arg7[%c0_34, %c0_35] : memref<1x128xf32, #tpu.memory_space<vmem>>, vector<1x128xf32>
    %56 = vector.broadcast %55 : vector<1x128xf32> to vector<128x128xf32>
    %57 = arith.addf %54, %56 : vector<128x128xf32>
    %cst_36 = arith.constant 0.000000e+00 : f32
    %58 = vector.broadcast %cst_36 : f32 to vector<128x128xf32>
    %59 = arith.maximumf %57, %58 : vector<128x128xf32>
    %60 = arith.truncf %59 : vector<128x128xf32> to vector<128x128xbf16>
    %c0_37 = arith.constant 0 : index
    %c0_38 = arith.constant 0 : index
    %61 = vector.load %arg5[%c0_37, %c0_38] : memref<128x16xbf16, #tpu.memory_space<vmem>>, vector<128x16xbf16>
    %cst_39 = arith.constant dense<0.000000e+00> : vector<128x16xf32>
    %62 = tpu.matmul %60, %61, %cst_39 {dimension_numbers = #tpu.dot_dimension_numbers<[1], [0], [0], [1], [0, 0, 1, 1], [], []>} : vector<128x128xbf16>, vector<128x16xbf16>, vector<128x16xf32> -> vector<128x16xf32>
    %c1_i32_40 = arith.constant 1 : i32
    %63 = arith.addi %1, %c1_i32_40 : i32
    %c0_41 = arith.constant 0 : index
    %64 = arith.index_cast %63 : i32 to index
    %c0_42 = arith.constant 0 : index
    %c0_43 = arith.constant 0 : index
    %65 = vector.load %arg2[%c0_41, %64, %c0_42, %c0_43] : memref<1x18x16x16xbf16, #tpu.memory_space<vmem>>, vector<1x8x16x16xbf16>
    %66 = vector.shape_cast %65 : vector<1x8x16x16xbf16> to vector<8x16x16xbf16>
    %67 = vector.shape_cast %66 : vector<8x16x16xbf16> to vector<128x16xbf16>
    %68 = arith.extf %67 : vector<128x16xbf16> to vector<128x16xf32>
    %c0_44 = arith.constant 0 : index
    %c0_45 = arith.constant 0 : index
    %69 = vector.load %arg8[%c0_44, %c0_45] : memref<1x16xf32, #tpu.memory_space<vmem>>, vector<1x16xf32>
    %70 = vector.broadcast %69 : vector<1x16xf32> to vector<128x16xf32>
    %71 = arith.addf %62, %70 : vector<128x16xf32>
    %72 = arith.addf %71, %68 : vector<128x16xf32>
    %cst_46 = arith.constant 0.000000e+00 : f32
    %73 = vector.broadcast %cst_46 : f32 to vector<128x16xf32>
    %74 = arith.maximumf %72, %73 : vector<128x16xf32>
    %75 = vector.shape_cast %74 : vector<128x16xf32> to vector<8x16x16xf32>
    %76 = arith.truncf %75 : vector<8x16x16xf32> to vector<8x16x16xbf16>
    %c0_47 = arith.constant 0 : index
    %c0_48 = arith.constant 0 : index
    %c0_49 = arith.constant 0 : index
    %c0_50 = arith.constant 0 : index
    %77 = vector.load %arg9[%c0_47, %c0_48, %c0_49, %c0_50] : memref<1x8x16x16xbf16, #tpu.memory_space<vmem>>, vector<1x8x16x16xbf16>
    %78 = vector.shape_cast %77 : vector<1x8x16x16xbf16> to vector<8x16x16xbf16>
    %79 = vector.shape_cast %76 : vector<8x16x16xbf16> to vector<1x8x16x16xbf16>
    tpu.vector_store %arg9[%c0_47, %c0_48, %c0_49, %c0_50], %79 {strides = array<i32>} : memref<1x8x16x16xbf16, #tpu.memory_space<vmem>>, vector<1x8x16x16xbf16>,
    return
  }
  func.func @transform_0(%arg0: i32, %arg1: i32) -> (i32, i32, i32, i32) {
    %c0_i32 = arith.constant 0 : i32
    %c0_i32_0 = arith.constant 0 : i32
    %c0_i32_1 = arith.constant 0 : i32
    %c0_i32_2 = arith.constant 0 : i32
    return %arg0, %c0_i32, %c0_i32_0, %c0_i32_1 : i32, i32, i32, i32
  }
  func.func @transform_1(%arg0: i32, %arg1: i32) -> (i32, i32) {
    %c0_i32 = arith.constant 0 : i32
    %c0_i32_0 = arith.constant 0 : i32
    %c0_i32_1 = arith.constant 0 : i32
    return %c0_i32, %c0_i32_0 : i32, i32
  }
  func.func @transform_2(%arg0: i32, %arg1: i32) -> (i32, i32, i32) {
    %c0_i32 = arith.constant 0 : i32
    %c0_i32_0 = arith.constant 0 : i32
    %c0_i32_1 = arith.constant 0 : i32
    %c0_i32_2 = arith.constant 0 : i32
    return %c0_i32, %c0_i32_0, %c0_i32_1 : i32, i32, i32
  }
  func.func @transform_3(%arg0: i32, %arg1: i32) -> (i32, i32) {
    %c0_i32 = arith.constant 0 : i32
    %c0_i32_0 = arith.constant 0 : i32
    %c0_i32_1 = arith.constant 0 : i32
    return %c0_i32, %c0_i32_0 : i32, i32
  }
  func.func @transform_4(%arg0: i32, %arg1: i32) -> (i32, i32) {
    %c0_i32 = arith.constant 0 : i32
    %c0_i32_0 = arith.constant 0 : i32
    %c0_i32_1 = arith.constant 0 : i32
    return %c0_i32, %c0_i32_0 : i32, i32
  }
  func.func @transform_5(%arg0: i32, %arg1: i32) -> (i32, i32) {
    %c0_i32 = arith.constant 0 : i32
    %c0_i32_0 = arith.constant 0 : i32
    %c0_i32_1 = arith.constant 0 : i32
    return %c0_i32, %c0_i32_0 : i32, i32
  }
  func.func @transform_6(%arg0: i32, %arg1: i32) -> (i32, i32) {
    %c0_i32 = arith.constant 0 : i32
    %c0_i32_0 = arith.constant 0 : i32
    %c0_i32_1 = arith.constant 0 : i32
    return %c0_i32, %c0_i32_0 : i32, i32
  }
  func.func @transform_7(%arg0: i32, %arg1: i32) -> (i32, i32, i32, i32) {
    %c0_i32 = arith.constant 0 : i32
    %c0_i32_0 = arith.constant 0 : i32
    %c0_i32_1 = arith.constant 0 : i32
    return %arg0, %arg1, %c0_i32, %c0_i32_0 : i32, i32, i32, i32
  }
}

</mosaic_0001>

<bundles_post_ra>
// kernel: tpu_custom_call.1
= control target key start
LH: loop header
LB: loop body
LE: loop exit
PB: predicated region body
PF: predicated region fallthrough
CT: control target
= control target key end

     0   :  { %12 = vsyncpa [#allocation4], 0  ;;  %s4958_s0 = inlined_call_operand.vmem [shape: bf16[2,18,16,16], index: 0, kind: input, shape index: {}]   ;;  %s4959_s1 = inlined_call_operand.vmem [shape: bf16[16,128], index: 1, kind: input, shape index: {}]   ;;  %s4960_s2 = inlined_call_operand.vmem [shape: bf16[3,384,128], index: 2, kind: input, shape index: {}]   ;;  %s4961_s3 = inlined_call_operand.vmem [shape: bf16[128,16], index: 3, kind: input, shape index: {}]   ;;  %s4962_s4 = inlined_call_operand.vmem [shape: f32[1,128], index: 4, kind: input, shape index: {}]   ;;  %s4963_s5 = inlined_call_operand.vmem [shape: f32[1,128], index: 5, kind: input, shape index: {}]   ;;  %s4964_s6 = inlined_call_operand.vmem [shape: f32[1,16], index: 6, kind: input, shape index: {}]   ;;  %s4965_s7 = inlined_call_operand.hbm [shape: bf16[2,16,16,16], index: 7, kind: output, shape index: {}]  }
   0x1   :  { %14 = vsyncpa [#allocation4 + $0x1], 0  ;;  %s4041_s24 = smov 0   ;;  %s4043_s25 = smov 0  }
   0x2   :  { %s4045_s26 = smov 0   ;;  %s4047_s27 = smov 0  }
   0x3   :  { %s4049_s28 = smov 0   ;;  %s4051_s29 = smov 0  }
   0x4   :  { %s4053_s30 = smov 0   ;;  %s4055_s8 = smov 0  }
   0x5 LB: > { %s2817_s9 = sadd.s32 4294967295, %s3996_s8   ;;  %s2818_s10 = sadd.s32 4294967294, %s3996_s8   ;;  %s3996_s8 = sphi %s4055_s8, %s20_s8   ;;  %s3992_s30 = sphi %s4053_s30, %s4986_s30   ;;  %s3988_s29 = sphi %s4051_s29, %s4985_s29   ;;  %s3984_s28 = sphi %s4049_s28, %s4984_s28   ;;  %s3980_s27 = sphi %s4047_s27, %s4983_s27   ;;  %s3976_s26 = sphi %s4045_s26, %s4982_s26   ;;  %s3972_s25 = sphi %s4043_s25, %s4981_s25   ;;  %s3968_s24 = sphi %s4041_s24, %s4980_s24  }
   0x6   : > { %s29_s11 = sadd.s32 1, %s3988_s29  ;;  %s32_s12 = sadd.s32 1, %s3992_s30 }
   0x7   : > { %p30_p0 = scmp.ge.s32.totalorder %s29_s11, 2  ;;  %p203_p1 = scmp.ne.s32.totalorder %s3976_s26, %s3972_s25 }
   0x8   : > { %p204_p2 = scmp.eq.s32.totalorder %s2817_s9, 3  ;;  %p209_p5 = scmp.ne.s32.totalorder %s3972_s25, %s3968_s24 }
   0x9   : > { %s4988_s11 = smov (%p30_p0, %s29_s11), 0  ;;  %s4990_s12 = smov (!%p30_p0, %s32_s12), %s3992_s30 }
   0xa   : > { %s189_s13 = ssub.s32 %s3988_s29, %s4988_s11  ;;  %p4092_p3 = por %p204_p2, %p203_p1 }
   0xb   : > { %p34_p4 = scmp.ge.s32.totalorder %s4990_s12, 2  ;;  %p210_p6 = scmp.eq.s32.totalorder %s2818_s10, 3 }
   0xc   : > { %p2821_p7 = scmp.ge.s32.totalorder %s3996_s8, 1  ;;  %p254_p9 = scmp.lt.s32.totalorder %s3996_s8, 5 }
   0xd   : > { %s4992_s12 = smov (%p34_p4, %s4990_s12), 0  ;;  %p4101_p8 = por %p210_p6, %p209_p5 }
   0xe   : > { %s188_s16 = ssub.s32 %s3992_s30, %s4992_s12  ;;  %s193_s17 = sadd.s32 1, %s3976_s26 }
   0xf   : > { %s190_s18 = sor.u32 %s189_s13, %s188_s16  ;;  %p255_p10 = pnand %p2821_p7, %p254_p9 }
  0x10   : > { %p191_p11 = scmp.eq.s32.totalorder %s190_s18, 0  ;;  %v3781_v0 = vld [vmem:[%s4959_s1] sm:$0xff] (!%p255_p10)   ;;  %p286_p12 = scmp.lt.s32.totalorder (!%p255_p10), %s3984_s28, 1  ;;  %vm382_vm0 = vcmask (!%p255_p10), 130048   ;;  %v3794_v8 = vld [vmem:[%s4960_s2 + $0x108] sm:$0xff] (!%p255_p10)   ;;  %v3796_v15 = vld [vmem:[%s4960_s2 + $0x110] sm:$0xff] (!%p255_p10)  }
  0x11   : > { %258 = sbr.rel (%p255_p10) target bundleno = 916 (0x394), region = 48  ;;  %3475 = vmatprep.subr.bf16.mxu0 (!%p255_p10), %v3781_v0  ;;  %3625 = vmatprep.subr.bf16.mxu1 (!%p255_p10), %v3781_v0  ;;  %v3792_v1 = vld [vmem:[%s4960_s2 + $0x100] sm:$0xff] (!%p255_p10)   ;;  %s3129_s13 = sshll.u32 (!%p255_p10), %s3980_s27, 6  ;;  %v3795_v11 = vld [vmem:[%s4960_s2 + $0xc8] sm:$0xff] (!%p255_p10)   ;;  %vm588_vm1 = vcmask (!%p255_p10), 1040384   ;;  %v3797_v16 = vld [vmem:[%s4960_s2 + $0xd0] sm:$0xff] (!%p255_p10)  }
  0x12   : > { %s4110_s19 = scalar_select %p191_p11, %s3976_s26, %s193_s17  }
  0x13   : > { %3476 = vmatpush3.bf16.msra.mxu0 (!%p255_p10), %v3781_v0  ;;  %3626 = vmatpush3.bf16.msra.mxu1 (!%p255_p10), %v3781_v0  ;;  %v3793_v6 = vld [vmem:[%s4960_s2 + $0xc0] sm:$0xff] (!%p255_p10)   ;;  %vm589_vm2 = vsmask.f32 (!%p255_p10), 256  ;;  %v594_v18 = vld [vmem:[#allocation2 + $0xc] sm:$0x1] (!%p255_p10)  ;;  %v3799_v26 = vld [vmem:[%s4960_s2 + $0x118] sm:$0xff] (!%p255_p10)  }
  0x14   : > { %3219 = vmatprep.subr.bf16.mxu1 (!%p255_p10), %v3792_v1  ;;  %vm4162_vm3 = vmand (!%p255_p10), %vm588_vm1, %vm589_vm2  ;;  %vm621_vm4 = vsmask.f32 (!%p255_p10), 7938  ;;  %v591_v21 = vld [vmem:[#allocation2] sm:$0x1] (!%p255_p10)  ;;  %v626_v22 = vld [vmem:[#allocation2 + $0x14] sm:$0x1] (!%p255_p10) }
  0x15   : > { %v595_v19 = vsel (!%p255_p10), %vm4162_vm3, 0, %v594_v18  ;;  %vm4169_vm5 = vmand (!%p255_p10), %vm588_vm1, %vm621_vm4  ;;  %v3798_v23 = vld [vmem:[%s4960_s2 + $0x140] sm:$0xff] (!%p255_p10)   ;;  %v592_v24 = vsel (!%p255_p10), %vm4162_vm3, 0, %v591_v21  ;;  %v3800_v27 = vld [vmem:[%s4960_s2 + $0xd8] sm:$0xff] (!%p255_p10)   ;;  %p546_p13 = scmp.eq.s32.totalorder (!%p255_p10), %s3980_s27, 0  ;;  %p550_p0 = scmp.eq.s32.totalorder (!%p255_p10), %s3980_s27, 1 }
  0x16   : > { %596 = vst [vmem:[#allocation2 + $0xc] sm:$0x1] (!%p255_p10), %v595_v19  ;;  %v627_v25 = vsel (!%p255_p10), %vm4169_vm5, 0, %v626_v22  ;;  %593 = vst [vmem:[#allocation2] sm:$0x1] (!%p255_p10), %v592_v24  ;;  %3497 = vmatprep.subr.bf16.mxu0 (!%p255_p10), %v3798_v23  ;;  %v3801_v30 = vld [vmem:[%s4960_s2 + $0x148] sm:$0xff] (!%p255_p10)  }
  0x17   : > { %628 = vst [vmem:[#allocation2 + $0x14] sm:$0x1] (!%p255_p10), %v627_v25  ;;  %v623_v28 = vld [vmem:[#allocation2 + $0x8] sm:$0x1] (!%p255_p10)  ;;  %v600_v31 = vld [vmem:[#allocation2 + $0x24] sm:$0x1] (!%p255_p10) }
  0x18   : > { %s287_s22 = scalar_select %p286_p12, %s3984_s28, 1  ;;  %v624_v29 = vsel %vm4169_vm5, 0, %v623_v28  ;;  %v601_v32 = vsel %vm4162_vm3, 0, %v600_v31  ;;  %v597_v33 = vld [vmem:[#allocation2 + $0x18] sm:$0x1]  ;;  %v3802_v34 = vld [vmem:[%s4960_s2 + $0x120] sm:$0xff]  }
  0x19   : > { %625 = vst [vmem:[#allocation2 + $0x8] sm:$0x1] %v624_v29  ;;  %602 = vst [vmem:[#allocation2 + $0x24] sm:$0x1] %v601_v32  ;;  %v598_v35 = vsel %vm4162_vm3, 0, %v597_v33  ;;  %v3803_v36 = vld [vmem:[%s4960_s2 + $0xe0] sm:$0xff]  }
  0x1a   : > { %s3707_s10 = smul.u32 144, %s287_s22  ;;  %599 = vst [vmem:[#allocation2 + $0x18] sm:$0x1] %v598_v35  ;;  %v632_v37 = vld [vmem:[#allocation2 + $0x2c] sm:$0x1]  ;;  %v3804_v39 = vld [vmem:[%s4960_s2 + $0x150] sm:$0xff]  }
  0x1b   : > { %v633_v38 = vsel %vm4169_vm5, 0, %v632_v37  ;;  %v3805_v40 = vld [vmem:[%s4960_s2 + $0x128] sm:$0xff]   ;;  %v629_v42 = vld [vmem:[#allocation2 + $0x20] sm:$0x1]  ;;  %v3807_v44 = vld [vmem:[%s4960_s2 + $0x158] sm:$0xff]   ;;  %vm905_vm7 = vcmask 1043456  }
  0x1c   : > { %s290_s18 = scalar_lea.vmem %s4958_s0, %s3707_s10  ;;  %634 = vst [vmem:[#allocation2 + $0x2c] sm:$0x1] %v633_v38  ;;  %v3806_v41 = vld [vmem:[%s4960_s2 + $0xe8] sm:$0xff]   ;;  %v630_v43 = vsel %vm4169_vm5, 0, %v629_v42  ;;  %v3808_v45 = vld [vmem:[%s4960_s2 + $0x130] sm:$0xff]   ;;  %v3810_v52 = vld [vmem:[%s4960_s2 + $0x160] sm:$0xff]  }
  0x1d   : > { %s4124_s20 = scalar_lea.vmem %s290_s18, %s3129_s13  ;;  %631 = vst [vmem:[#allocation2 + $0x20] sm:$0x1] %v630_v43  ;;  %v3809_v46 = vld [vmem:[%s4960_s2 + $0xf0] sm:$0xff]   ;;  %v606_v47 = vld [vmem:[#allocation2 + $0x3c] sm:$0x1]  ;;  %v3813_v58 = vld [vmem:[%s4960_s2 + $0x168] sm:$0xff]  }
  0x1e   : > { %v3782_v2 = vld [vmem:[%s4124_s20] sm:$0xff]   ;;  %v3783_v3 = vld [vmem:[%s4124_s20 + $0x8] sm:$0xff]   ;;  %v3784_v4 = vld [vmem:[%s4124_s20 + $0x10] sm:$0xff]   ;;  %v607_v48 = vsel %vm4162_vm3, 0, %v606_v47  ;;  %s547_s13 = scalar_select %p546_p13, 1, 0 }
  0x1f   : > { %3477 = vmatprep.mubr.msk.bf16.mxu0 %vm382_vm0, %v3782_v2  ;;  %v3785_v5 = vld [vmem:[%s4124_s20 + $0x18] sm:$0xff]   ;;  %v3786_v7 = vld [vmem:[%s4124_s20 + $0x20] sm:$0xff]   ;;  %v3791_v10 = vld [vmem:[%s4124_s20 + $0x48] sm:$0xff]   ;;  %608 = vst [vmem:[#allocation2 + $0x3c] sm:$0x1] %v607_v48  ;;  %vm1137_vm12 = vcmask 1046528  }
  0x20   : > { %3478 = vmatmul.mubr.msk.bf16.vlgmr.msra.gmra.mrb[0].mxu0 %vm382_vm0, %v3783_v3  ;;  %v3790_v9 = vld [vmem:[%s4124_s20 + $0x40] sm:$0xff]   ;;  %v3787_v12 = vld [vmem:[%s4124_s20 + $0x28] sm:$0xff]   ;;  %v3788_v13 = vld [vmem:[%s4124_s20 + $0x30] sm:$0xff]   ;;  %v548_v18 = vstv %s547_s13  ;;  %s4285_s18 = scalar_select %p550_p0, 1, 0  ;;  %vm2701_vm1 = vcmask 125952  }
  0x21   : > { %3481 = vmatprep.mubr.msk.bf16.mxu0 %vm382_vm0, %v3784_v4  ;;  %3493 = vmatprep.mubr.msk.bf16.mxu1 %vm382_vm0, %v3790_v9  ;;  %v3789_v14 = vld [vmem:[%s4124_s20 + $0x38] sm:$0xff]   ;;  %v603_v49 = vld [vmem:[#allocation2 + $0x30] sm:$0x1]  ;;  %v638_v51 = vld [vmem:[#allocation2 + $0x44] sm:$0x1]  ;;  %vm4280_vm6 = vcmp.eq.s32.totalorder %v548_v18, 1 }
  0x22   : > { %3494 = vmatmul.mubr.msk.bf16.vlgmr.msra.gmra.mrb[0].mxu1 %vm382_vm0, %v3791_v10  ;;  %3498 = vmatpush3.bf16.msra.mxu0 %v3798_v23  ;;  %v604_v50 = vsel %vm4162_vm3, 0, %v603_v49  ;;  %v3811_v53 = vld [vmem:[%s4960_s2 + $0x138] sm:$0xff]   ;;  %v639_v54 = vsel %vm4169_vm5, 0, %v638_v51  ;;  %v612_v59 = vld [vmem:[#allocation2 + $0x54] sm:$0x1]  ;;  %vm4304_vm9 = vmand %vm905_vm7, %vm621_vm4  ;;  %s283_s10 = sand.u32 1, %s3972_s25  }
  0x23   : > { %3220 = vmatpush3.bf16.msra.mxu1 %v3793_v6  ;;  %3499 = vmatprep.subr.bf16.mxu0 %v3801_v30  ;;  %605 = vst [vmem:[#allocation2 + $0x30] sm:$0x1] %v604_v50  ;;  %v635_v55 = vld [vmem:[#allocation2 + $0x38] sm:$0x1]  ;;  %640 = vst [vmem:[#allocation2 + $0x44] sm:$0x1] %v639_v54 }
  0x24   : > { %3221 = vmatprep.subr.bf16.mxu1 %v3794_v8  ;;  %v3812_v56 = vld [vmem:[%s4960_s2 + $0xf8] sm:$0xff]   ;;  %v636_v57 = vsel %vm4169_vm5, 0, %v635_v55  ;;  %v613_v60 = vsel %vm4162_vm3, 0, %v612_v59  ;;  %v609_v61 = vld [vmem:[#allocation2 + $0x48] sm:$0x1]  ;;  %v3815_v3 = vld [vmem:[%s4960_s2 + $0x170] sm:$0xff]  }
  0x25   : > { %637 = vst [vmem:[#allocation2 + $0x38] sm:$0x1] %v636_v57  ;;  %614 = vst [vmem:[#allocation2 + $0x54] sm:$0x1] %v613_v60  ;;  %v610_v62 = vsel %vm4162_vm3, 0, %v609_v61  ;;  %v3832_v17 = vld [vmem:[%s4960_s2 + $0x10] sm:$0xff]  }
  0x26   : > { %3500 = vmatpush3.bf16.msra.mxu0 %v3801_v30  ;;  %v644_v63 = vld [vmem:[#allocation2 + $0x5c] sm:$0x1]  ;;  %611 = vst [vmem:[#allocation2 + $0x48] sm:$0x1] %v610_v62  ;;  %v641_v1 = vld [vmem:[#allocation2 + $0x50] sm:$0x1]  ;;  %vm2995_vm13 = vmneg %vm4280_vm6 }
  0x27   : > { %3222 = vmatpush3.bf16.msra.mxu1 %v3795_v11  ;;  %3501 = vmatprep.subr.bf16.mxu0 %v3804_v39  ;;  %v645_v0 = vsel %vm4169_vm5, 0, %v644_v63  ;;  %v642_v2 = vsel %vm4169_vm5, 0, %v641_v1  ;;  %v618_v4 = vld [vmem:[#allocation2 + $0x6c] sm:$0x1]  ;;  %v615_v6 = vld [vmem:[#allocation2 + $0x60] sm:$0x1]  ;;  %vm2997_vm14 = vmpackc.low %vm2995_vm13, %vm2995_vm13 }
  0x28   : > { %3482 = vmatmul.mubr.msk.bf16.gmra.mrb[4].mxu0 %vm382_vm0, %v3785_v5  ;;  %3223 = vmatprep.subr.bf16.mxu1 %v3796_v15  ;;  %646 = vst [vmem:[#allocation2 + $0x5c] sm:$0x1] %v645_v0  ;;  %643 = vst [vmem:[#allocation2 + $0x50] sm:$0x1] %v642_v2  ;;  %v619_v5 = vsel %vm4162_vm3, 0, %v618_v4  ;;  %v3818_v11 = vld [vmem:[%s4960_s2 + $0x178] sm:$0xff]  }
  0x29   : > { %3485 = vmatprep.mubr.msk.bf16.mxu0 %vm382_vm0, %v3786_v7  ;;  %620 = vst [vmem:[#allocation2 + $0x6c] sm:$0x1] %v619_v5  ;;  %v616_v7 = vsel %vm4162_vm3, 0, %v615_v6  ;;  %v650_v8 = vld [vmem:[#allocation2 + $0x74] sm:$0x1]  ;;  %v3856_v24 = vld [vmem:[%s4960_s2 + $0x38] sm:$0xff]  }
  0x2a   : > { %3502 = vmatpush3.bf16.msra.mxu0 %v3804_v39  ;;  %617 = vst [vmem:[#allocation2 + $0x60] sm:$0x1] %v616_v7  ;;  %v651_v9 = vsel %vm4169_vm5, 0, %v650_v8  ;;  %v647_v10 = vld [vmem:[#allocation2 + $0x68] sm:$0x1]  ;;  %s2822_s13 = sshll.u32 %s283_s10, 6 }
  0x2b   : > { %3224 = vmatpush3.bf16.msra.mxu1 %v3797_v16  ;;  %3503 = vmatprep.subr.bf16.mxu0 %v3807_v44  ;;  %652 = vst [vmem:[#allocation2 + $0x74] sm:$0x1] %v651_v9  ;;  %v4275_v15 = vld [vmem:[%s4962_s4] ss:$0 sm:$0xff]  ;;  %vm703_vm8 = vsmask.f32 4368 }
  0x2c   : > { %3225 = vmatprep.subr.bf16.mxu1 %v3799_v26  ;;  %v914_v50 = vld [vmem:[#allocation2 + $0xc] sm:$0xf]  ;;  %v907_v63 = vld [vmem:[#allocation2] sm:$0xf]  ;;  %vm4318_vm10 = vmor %vm589_vm2, %vm703_vm8  ;;  %s4844_s16 = scalar_lea.vmem [#allocation3], %s2822_s13  ;;  %s3167_s17 = sshll.u32 %s3980_s27, 4 }
  0x2d   : > { %v918_v8 = vld [vmem:[#allocation2 + $0x14] sm:$0x1]  ;;  %s4906_s9 = scalar_lea.sflag [#allocation4], %s283_s10 }
  0x2e   : > { %3504 = vmatpush3.bf16.msra.mxu0 %v3807_v44 }
  0x2f   : > { %3226 = vmatpush3.bf16.msra.mxu1 %v3800_v27  ;;  %3505 = vmatprep.subr.bf16.mxu0 %v3810_v52 }
  0x30   : > { %3486 = vmatmul.mubr.msk.bf16.gmra.mrb[8].mxu0 %vm382_vm0, %v3787_v12  ;;  %3227 = vmatprep.subr.bf16.mxu1 %v3802_v34  ;;  %v648_v12 = vsel %vm4169_vm5, 0, %v647_v10 }
  0x31   : > { %3489 = vmatprep.mubr.msk.bf16.mxu0 %vm382_vm0, %v3788_v13  ;;  %649 = vst [vmem:[#allocation2 + $0x68] sm:$0x1] %v648_v12  ;;  %v3821_v13 = vld [vmem:[%s4960_s2 + $0x40] sm:$0xff]   ;;  %v911_v12 = vld [vmem:[#allocation2 + $0x8] sm:$0x1] }
  0x32   : > { %3506 = vmatpush3.bf16.msra.mxu0 %v3810_v52 }
  0x33   : > { %3228 = vmatpush3.bf16.msra.mxu1 %v3803_v36  ;;  %3507 = vmatprep.subr.bf16.mxu0 %v3813_v58  ;;  %v552_v36 = vstv %s4285_s18  ;;  %s3124_s18 = sshll.u32 %s3984_s28, 5 }
  0x34   : > { %3229 = vmatprep.subr.bf16.mxu1 %v3805_v40  ;;  %vm4376_vm11 = vcmp.eq.s32.totalorder %v552_v36, 1  ;;  %v946_v36 = vld [vmem:[#allocation2 + $0x44] sm:$0x1]  ;;  %s2732_s27 = sadd.s32 %s3167_s17, %s3124_s18  ;;  %s3998_s17 = smov [#allocation3]  }
  0x35   : > { %vm3072_vm15 = vmneg %vm4376_vm11  ;;  %s3125_s28 = sshll.u32 %s2732_s27, 6  ;;  %s3906_s18 = sshll.u32 %s3998_s17, 4  ;;  %s3907_s18 = int_to_ptr.vmem [resolvable:$false] %s3906_s18 }
  0x36   : > { %3508 = vmatpush3.bf16.msra.mxu0 %v3813_v58  ;;  %s4894_s23 = scalar_lea.hbm %s4965_s7, %s3125_s28  ;;  %s3908_s27 = scalar_lea.vmem %s3907_s18, 2048 }
  0x37   : > { %3230 = vmatpush3.bf16.msra.mxu1 %v3806_v41  ;;  %3509 = vmatprep.subr.bf16.mxu0 %v3815_v3 }
  0x38   : > { %3490 = vmatmul.mubr.msk.bf16.gmra.mrb[12].mxu0 %vm382_vm0, %v3789_v14  ;;  %3231 = vmatprep.subr.bf16.mxu1 %v3808_v45  ;;  %v3847_v14 = vld [vmem:[%s4960_s2 + $0x1c0] sm:$0xff]   ;;  %vm3074_vm0 = vmpackc.low %vm3072_vm15, %vm3072_vm15 }
  0x3a   : > { %3510 = vmatpush3.bf16.msra.mxu0 %v3815_v3 }
  0x3b   : > { %3232 = vmatpush3.bf16.msra.mxu1 %v3809_v46  ;;  %3511 = vmatprep.subr.bf16.mxu0 %v3818_v11 }
  0x3c   : > { %3233 = vmatprep.subr.bf16.mxu1 %v3811_v53 }
  0x3e   : > { %3512 = vmatpush3.bf16.msra.mxu0 %v3818_v11 }
  0x3f   : > { %3234 = vmatpush3.bf16.msra.mxu1 %v3812_v56  ;;  %3299 = vmatprep.subr.bf16.mxu0 %v3821_v13 }
  0x40   : > { %3379 = vmatprep.subr.bf16.mxu1 %v3847_v14 }
  0xf3   : > { %v3479_v16 = vpop.f32.mrb[0].mxu0 }
  0xf4   : > { %v456_v19 = vadd.f32 %v3479_v16, %v4275_v15  ;;  %v447_v20 = vpop.f32.mrb[1].mxu0 }
  0xf5   : > { %v448_v21 = vadd.f32 %v4275_v15, %v447_v20  ;;  %v3480_v22 = vpop.f32.mrb[2].mxu0  ;;  %v4297_v42 = vpop.f32.mrb[0].mxu1 }
  0xf6   : > { %v528_v23 = vmax.f32 %v456_v19, 0.0  ;;  %v459_v25 = vadd.f32 %v3480_v22, %v4275_v15  ;;  %v450_v26 = vpop.f32.mrb[3].mxu0  ;;  %v4300_v48 = vpop.f32.mrb[1].mxu1 }
  0xf7   : > { %v526_v27 = vmax.f32 %v448_v21, 0.0  ;;  %v451_v28 = vadd.f32 %v4275_v15, %v450_v26  ;;  %v4310_v56 = vpop.f32.mrb[2].mxu1 }
  0xf8   : > { %v3132_v29 = vpack.c.bf16 %v528_v23, %v528_v23  ;;  %v529_v30 = vmax.f32 %v459_v25, 0.0  ;;  %v4312_v62 = vpop.f32.mrb[3].mxu1 }
  0xf9   : > { %v558_v31 = vsel %vm4280_vm6, 0.0, %v526_v27  ;;  %v527_v32 = vmax.f32 %v451_v28, 0.0 }
  0xfa   : > { %v723_v33 = vshrl.u32 %v3132_v29, 16  ;;  %v3130_v34 = vpack.c.bf16 %v558_v31, %v558_v31  ;;  %v4290_v35 = vpack.c.bf16 %v529_v30, %v528_v23  ;;  %v726_v37 = vshll.u32 %v3132_v29, 16 }
  0xfb   : > { %v3133_v38 = vpack.c.bf16 %v529_v30, %v529_v30  ;;  %v559_v39 = vsel %vm4280_vm6, 0.0, %v527_v32  ;;  %v4295_v40 = vpack.c.bf16 %v527_v32, %v526_v27  ;;  %v3483_v41 = vpop.f32.mrb[4].mxu0 }
  0xfc   : > { %v725_v43 = vrot.slane %v723_v33, 7  ;;  %v706_v44 = vshrl.u32 %v3130_v34, 16  ;;  %v709_v45 = vshll.u32 %v3130_v34, 16  ;;  %v3131_v46 = vpack.c.bf16 %v559_v39, %v559_v39  ;;  %v463_v47 = vpop.f32.mrb[5].mxu0  ;;  %1451 = vmatprep.mubr.bf16.mxu1 %v4290_v35  ;;  %v928_v39 = vld [vmem:[#allocation2 + $0x24] sm:$0xf] }
  0xfd   : > { %v731_v51 = vshrl.u32 %v3133_v38, 16  ;;  %v734_v52 = vshll.u32 %v3133_v38, 16  ;;  %v472_v53 = vadd.f32 %v3483_v41, %v4275_v15  ;;  %v464_v54 = vadd.f32 %v4275_v15, %v463_v47  ;;  %v3484_v55 = vpop.f32.mrb[6].mxu0 }
  0xfe   : > { %v728_v57 = vor.u32 %v726_v37, %v725_v43  ;;  %v729_v58 = vrot.slane %v725_v43, 4  ;;  %v708_v59 = vrot.slane %v706_v44, 7  ;;  %v714_v60 = vshrl.u32 %v3131_v46, 16  ;;  %v466_v61 = vpop.f32.mrb[7].mxu0 }
  0xff   : > { %v733_v0 = vrot.slane %v731_v51, 7  ;;  %v717_v1 = vshll.u32 %v3131_v46, 16  ;;  %v532_v2 = vmax.f32 %v472_v53, 0.0  ;;  %v530_v3 = vmax.f32 %v464_v54, 0.0  ;;  %v921_v51 = vld [vmem:[#allocation2 + $0x18] sm:$0xf] }
 0x100   : > { %v915_v4 = vsel %vm4304_vm9, %v728_v57, %v914_v50  ;;  %v711_v5 = vor.u32 %v709_v45, %v708_v59  ;;  %v712_v6 = vrot.slane %v708_v59, 4  ;;  %v716_v9 = vrot.slane %v714_v60, 7 }
 0x101   : > { %916 = vst [vmem:[#allocation2 + $0xc] sm:$0xf] %v915_v4  ;;  %v736_v10 = vor.u32 %v734_v52, %v733_v0  ;;  %v738_v11 = vrot.slane %v733_v0, 4  ;;  %v3136_v13 = vpack.c.bf16 %v532_v2, %v532_v2  ;;  %v3134_v14 = vpack.c.bf16 %v530_v3, %v530_v3 }
 0x102   : > { %v908_v16 = vsel %vm4304_vm9, %v711_v5, %v907_v63  ;;  %v719_v18 = vor.u32 %v717_v1, %v716_v9  ;;  %v721_v19 = vrot.slane %v716_v9, 4  ;;  %v475_v20 = vadd.f32 %v3484_v55, %v4275_v15  ;;  %v932_v5 = vld [vmem:[#allocation2 + $0x2c] sm:$0x1] }
 0x103   : > { %909 = vst [vmem:[#allocation2] sm:$0xf] %v908_v16  ;;  %v737_v21 = vsel %vm4318_vm10, %v729_v58, %v736_v10  ;;  %v919_v22 = vsel %vm4162_vm3, %v738_v11, %v918_v8  ;;  %v757_v23 = vshrl.u32 %v3136_v13, 16  ;;  %v760_v25 = vshll.u32 %v3136_v13, 16  ;;  %v3487_v26 = vpop.f32.mrb[8].mxu0 }
 0x104   : > { %917 = vst [vmem:[#allocation2 + $0x10] sm:$0xf] %v737_v21  ;;  %920 = vst [vmem:[#allocation2 + $0x14] sm:$0x1] %v919_v22  ;;  %v720_v27 = vsel %vm4318_vm10, %v712_v6, %v719_v18  ;;  %v912_v28 = vsel %vm4162_vm3, %v721_v19, %v911_v12  ;;  %v740_v29 = vshrl.u32 %v3134_v14, 16  ;;  %v743_v30 = vshll.u32 %v3134_v14, 16 }
 0x105   : > { %v479_v31 = vpop.f32.mrb[9].mxu0  ;;  %910 = vst [vmem:[#allocation2 + $0x4] sm:$0xf] %v720_v27  ;;  %913 = vst [vmem:[#allocation2 + $0x8] sm:$0x1] %v912_v28  ;;  %v759_v32 = vrot.slane %v757_v23, 7  ;;  %v467_v34 = vadd.f32 %v4275_v15, %v466_v61  ;;  %v488_v37 = vadd.f32 %v3487_v26, %v4275_v15  ;;  %v4341_v46 = vadd.f32 %v4297_v42, %v4275_v15 }
 0x106   : > { %v533_v33 = vmax.f32 %v475_v20, 0.0  ;;  %v3488_v38 = vpop.f32.mrb[10].mxu0  ;;  %v4335_v41 = vrot.slane %v740_v29, 7  ;;  %v480_v43 = vadd.f32 %v4275_v15, %v479_v31  ;;  %v925_v23 = vld [vmem:[#allocation2 + $0x20] sm:$0x1] }
 0x107   : > { %v491_v44 = vadd.f32 %v3488_v38, %v4275_v15  ;;  %v482_v45 = vpop.f32.mrb[11].mxu0  ;;  %v762_v47 = vor.u32 %v760_v25, %v759_v32  ;;  %v763_v50 = vrot.slane %v759_v32, 4  ;;  %v531_v57 = vmax.f32 %v467_v34, 0.0  ;;  %v942_v31 = vld [vmem:[#allocation2 + $0x3c] sm:$0xf] }
 0x108   : > { %v4343_v52 = vpack.c.bf16 %v533_v33, %v532_v2  ;;  %v3137_v53 = vpack.c.bf16 %v533_v33, %v533_v33  ;;  %v745_v54 = vor.u32 %v743_v30, %v4335_v41  ;;  %v746_v55 = vrot.slane %v4335_v41, 4  ;;  %v935_v41 = vld [vmem:[#allocation2 + $0x30] sm:$0xf] }
 0x109   : > { %v536_v58 = vmax.f32 %v488_v37, 0.0  ;;  %v929_v59 = vsel %vm4304_vm9, %v762_v47, %v928_v39  ;;  %v534_v63 = vmax.f32 %v480_v43, 0.0  ;;  %v4351_v0 = vpack.c.bf16 %v531_v57, %v530_v3 }
 0x10a   : > { %v765_v60 = vshrl.u32 %v3137_v53, 16  ;;  %v768_v61 = vshll.u32 %v3137_v53, 16  ;;  %930 = vst [vmem:[#allocation2 + $0x24] sm:$0xf] %v929_v59  ;;  %v922_v42 = vsel %vm4304_vm9, %v745_v54, %v921_v51  ;;  %v3135_v1 = vpack.c.bf16 %v531_v57, %v531_v57 }
 0x10b   : > { %v3140_v2 = vpack.c.bf16 %v536_v58, %v536_v58  ;;  %923 = vst [vmem:[#allocation2 + $0x18] sm:$0xf] %v922_v42  ;;  %v3138_v6 = vpack.c.bf16 %v534_v63, %v534_v63  ;;  %v537_v8 = vmax.f32 %v491_v44, 0.0  ;;  %v483_v9 = vadd.f32 %v4275_v15, %v482_v45  ;;  %v3491_v10 = vpop.f32.mrb[12].mxu0  ;;  %v979_v42 = vld [vmem:[#allocation2 + $0xc] sm:$0xf] }
 0x10c   : > { %v767_v4 = vrot.slane %v765_v60, 7  ;;  %v748_v11 = vshrl.u32 %v3135_v1, 16  ;;  %v751_v12 = vshll.u32 %v3135_v1, 16  ;;  %v495_v16 = vpop.f32.mrb[13].mxu0 }
 0x10d   : > { %v791_v13 = vshrl.u32 %v3140_v2, 16  ;;  %v794_v14 = vshll.u32 %v3140_v2, 16  ;;  %v774_v20 = vshrl.u32 %v3138_v6, 16  ;;  %v777_v3 = vshll.u32 %v3138_v6, 16  ;;  %v3492_v21 = vpop.f32.mrb[14].mxu0  ;;  %v3853_v6 = vld [vmem:[%s4960_s2 + $0x1c8] sm:$0xff]  }
 0x10e   : > { %v770_v18 = vor.u32 %v768_v61, %v767_v4  ;;  %v772_v19 = vrot.slane %v767_v4, 4  ;;  %v750_v22 = vrot.slane %v748_v11, 7  ;;  %v4354_v26 = vpack.c.bf16 %v537_v8, %v536_v58  ;;  %v498_v28 = vpop.f32.mrb[15].mxu0  ;;  %v3886_v58 = vld [vmem:[%s4960_s2 + $0x218] sm:$0xff]  }
 0x10f   : > { %v793_v25 = vrot.slane %v791_v13, 7  ;;  %v3141_v27 = vpack.c.bf16 %v537_v8, %v537_v8  ;;  %v4360_v32 = vrot.slane %v774_v20, 7  ;;  %v535_v33 = vmax.f32 %v483_v9, 0.0 }
 0x110   : > { %v771_v29 = vsel %vm4318_vm10, %v763_v50, %v770_v18  ;;  %v933_v30 = vsel %vm4162_vm3, %v772_v19, %v932_v5  ;;  %v753_v34 = vor.u32 %v751_v12, %v750_v22  ;;  %v755_v37 = vrot.slane %v750_v22, 4  ;;  %v4364_v50 = vld [vmem:[#allocation2 + $0x10] sm:$0xf]  ;;  %v939_v22 = vld [vmem:[#allocation2 + $0x38] sm:$0x1] }
 0x111   : > { %931 = vst [vmem:[#allocation2 + $0x28] sm:$0xf] %v771_v29  ;;  %934 = vst [vmem:[#allocation2 + $0x2c] sm:$0x1] %v933_v30  ;;  %v796_v38 = vor.u32 %v794_v14, %v793_v25  ;;  %v797_v39 = vrot.slane %v793_v25, 4  ;;  %v779_v43 = vor.u32 %v777_v3, %v4360_v32  ;;  %v780_v44 = vrot.slane %v4360_v32, 4 }
 0x112   : > { %v799_v45 = vshrl.u32 %v3141_v27, 16  ;;  %v802_v47 = vshll.u32 %v3141_v27, 16  ;;  %v754_v51 = vsel %vm4318_vm10, %v746_v55, %v753_v34  ;;  %v926_v53 = vsel %vm4162_vm3, %v755_v37, %v925_v23  ;;  %v3858_v29 = vld [vmem:[%s4960_s2 + $0x1d0] sm:$0xff]  }
 0x113   : > { %v943_v54 = vsel %vm4304_vm9, %v796_v38, %v942_v31  ;;  %v4372_v57 = vpack.c.bf16 %v535_v33, %v534_v63  ;;  %924 = vst [vmem:[#allocation2 + $0x1c] sm:$0xf] %v754_v51  ;;  %927 = vst [vmem:[#allocation2 + $0x20] sm:$0x1] %v926_v53  ;;  %v936_v59 = vsel %vm4304_vm9, %v779_v43, %v935_v41  ;;  %v3848_v63 = vld [vmem:[%s4960_s2 + $0x180] sm:$0xff]   ;;  %v544_v3 = vmax.f32 %v4341_v46, 0.0 }
 0x114   : > { %944 = vst [vmem:[#allocation2 + $0x3c] sm:$0xf] %v943_v54  ;;  %v801_v55 = vrot.slane %v799_v45, 7  ;;  %v3139_v60 = vpack.c.bf16 %v535_v33, %v535_v33  ;;  %v504_v61 = vadd.f32 %v3491_v10, %v4275_v15  ;;  %937 = vst [vmem:[#allocation2 + $0x30] sm:$0xf] %v936_v59  ;;  %v496_v1 = vadd.f32 %v4275_v15, %v495_v16  ;;  %v3859_v51 = vld [vmem:[%s4960_s2 + $0x190] sm:$0xff]  }
 0x115   : > { %v507_v2 = vadd.f32 %v3492_v21, %v4275_v15  ;;  %v4389_v4 = vcombine.low %v979_v42, %v4364_v50  ;;  %v499_v5 = vadd.f32 %v4275_v15, %v498_v28  ;;  %v3854_v21 = vld [vmem:[%s4960_s2 + $0x188] sm:$0xff]  }
 0x116   : > { %v804_v8 = vor.u32 %v802_v47, %v801_v55  ;;  %v806_v9 = vrot.slane %v801_v55, 4  ;;  %v782_v10 = vshrl.u32 %v3139_v60, 16  ;;  %v785_v11 = vshll.u32 %v3139_v60, 16  ;;  %v956_v60 = vld [vmem:[#allocation2 + $0x54] sm:$0xf]  ;;  %v3868_v46 = vld [vmem:[%s4960_s2 + $0x1e8] sm:$0xff]  }
 0x117   : > { %v540_v12 = vmax.f32 %v504_v61, 0.0  ;;  %v538_v13 = vmax.f32 %v496_v1, 0.0  ;;  %v541_v14 = vmax.f32 %v507_v2, 0.0  ;;  %1452 = vmatmul.mubr.bf16.vlgmr.msra.gmra.mrb[4].mxu1 %v4389_v4  ;;  %v539_v16 = vmax.f32 %v499_v5, 0.0  ;;  %v949_v61 = vld [vmem:[#allocation2 + $0x48] sm:$0xf] }
 0x118   : > { %v805_v18 = vsel %vm4318_vm10, %v797_v39, %v804_v8  ;;  %v947_v19 = vsel %vm4162_vm3, %v806_v9, %v946_v36  ;;  %v784_v20 = vrot.slane %v782_v10, 7  ;;  %1459 = vmatprep.mubr.bf16.mxu1 %v4351_v0  ;;  %3380 = vmatpush3.bf16.msra.mxu1 %v3848_v63  ;;  %v576_v63 = vsel %vm4376_vm11, 0.0, %v544_v3  ;;  %v960_v9 = vld [vmem:[#allocation2 + $0x5c] sm:$0x1] }
 0x119   : > { %945 = vst [vmem:[#allocation2 + $0x40] sm:$0xf] %v805_v18  ;;  %948 = vst [vmem:[#allocation2 + $0x44] sm:$0x1] %v947_v19  ;;  %v3144_v23 = vpack.c.bf16 %v540_v12, %v540_v12  ;;  %v3142_v25 = vpack.c.bf16 %v538_v13, %v538_v13  ;;  %v4405_v27 = vpack.c.bf16 %v541_v14, %v540_v12  ;;  %3381 = vmatprep.subr.bf16.mxu1 %v3853_v6 }
 0x11a   : > { %v3145_v28 = vpack.c.bf16 %v541_v14, %v541_v14  ;;  %v787_v30 = vor.u32 %v785_v11, %v784_v20  ;;  %v789_v31 = vrot.slane %v784_v20, 4  ;;  %v4410_v32 = vpack.c.bf16 %v539_v16, %v538_v13  ;;  %v3863_v14 = vld [vmem:[%s4960_s2 + $0x198] sm:$0xff]   ;;  %v3865_v20 = vld [vmem:[%s4960_s2 + $0x1e0] sm:$0xff]  }
 0x11b   : > { %v3143_v33 = vpack.c.bf16 %v539_v16, %v539_v16  ;;  %v825_v34 = vshrl.u32 %v3144_v23, 16  ;;  %v828_v37 = vshll.u32 %v3144_v23, 16  ;;  %v808_v38 = vshrl.u32 %v3142_v25, 16  ;;  %v953_v16 = vld [vmem:[#allocation2 + $0x50] sm:$0x1] }
 0x11c   : > { %v811_v39 = vshll.u32 %v3142_v25, 16  ;;  %v788_v41 = vsel %vm4318_vm10, %v780_v44, %v787_v30  ;;  %v940_v43 = vsel %vm4162_vm3, %v789_v31, %v939_v22  ;;  %v833_v45 = vshrl.u32 %v3145_v28, 16  ;;  %3382 = vmatpush3.bf16.msra.mxu1 %v3854_v21  ;;  %v3862_v44 = vld [vmem:[%s4960_s2 + $0x1d8] sm:$0xff]  }
 0x11d   : > { %v836_v47 = vshll.u32 %v3145_v28, 16  ;;  %938 = vst [vmem:[#allocation2 + $0x34] sm:$0xf] %v788_v41  ;;  %941 = vst [vmem:[#allocation2 + $0x38] sm:$0x1] %v940_v43  ;;  %v827_v53 = vrot.slane %v825_v34, 7  ;;  %3383 = vmatprep.subr.bf16.mxu1 %v3858_v29  ;;  %v512_v36 = vadd.f32 %v4275_v15, %v4300_v48  ;;  %v523_v1 = vadd.f32 %v4310_v56, %v4275_v15 }
 0x11e   : > { %v810_v54 = vrot.slane %v808_v38, 7  ;;  %v816_v59 = vshrl.u32 %v3143_v33, 16  ;;  %v819_v55 = vshll.u32 %v3143_v33, 16  ;;  %v835_v42 = vrot.slane %v833_v45, 7  ;;  %v970_v38 = vld [vmem:[#allocation2 + $0x6c] sm:$0xf] }
 0x11f   : > { %v830_v2 = vor.u32 %v828_v37, %v827_v53  ;;  %v831_v5 = vrot.slane %v827_v53, 4  ;;  %v3148_v13 = vpack.c.bf16 %v576_v63, %v576_v63  ;;  %v4437_v18 = vmax.f32 %v512_v36, 0.0  ;;  %v3817_v28 = vld [vmem:[#allocation2 + $0x14] ss:$0 sps:$4 sm:$0x11]   ;;  %v3866_v45 = vld [vmem:[%s4960_s2 + $0x1a0] sm:$0xff]  }
 0x120   : > { %v813_v6 = vor.u32 %v811_v39, %v810_v54  ;;  %v814_v8 = vrot.slane %v810_v54, 4  ;;  %v838_v10 = vor.u32 %v836_v47, %v835_v42  ;;  %v840_v11 = vrot.slane %v835_v42, 4  ;;  %3384 = vmatpush3.bf16.msra.mxu1 %v3859_v51  ;;  %v999_v43 = vld [vmem:[#allocation2 + $0xc] sm:$0xe]  ;;  %v1001_v63 = vld [vmem:[#allocation2 + $0x18] sm:$0xe] }
 0x121   : > { %v818_v12 = vrot.slane %v816_v59, 7  ;;  %v957_v48 = vsel %vm4304_vm9, %v830_v2, %v956_v60  ;;  %v545_v19 = vmax.f32 %v523_v1, 0.0  ;;  %3385 = vmatprep.subr.bf16.mxu1 %v3862_v44  ;;  %v859_v29 = vshrl.u32 %v3148_v13, 16  ;;  %v981_v59 = vld [vmem:[#allocation2 + $0x18] sm:$0xf]  ;;  %v3869_v36 = vld [vmem:[%s4960_s2 + $0x1a8] sm:$0xff]  }
 0x122   : > { %v950_v56 = vsel %vm4304_vm9, %v813_v6, %v949_v61  ;;  %958 = vst [vmem:[#allocation2 + $0x54] sm:$0xf] %v957_v48  ;;  %v839_v21 = vsel %vm4318_vm10, %v831_v5, %v838_v10  ;;  %v961_v22 = vsel %vm4162_vm3, %v840_v11, %v960_v9  ;;  %v862_v30 = vshll.u32 %v3148_v13, 16  ;;  %v974_v5 = vld [vmem:[#allocation2 + $0x74] sm:$0x1] }
 0x123   : > { %951 = vst [vmem:[#allocation2 + $0x48] sm:$0xf] %v950_v56  ;;  %v821_v23 = vor.u32 %v819_v55, %v818_v12  ;;  %v823_v25 = vrot.slane %v818_v12, 4  ;;  %959 = vst [vmem:[#allocation2 + $0x58] sm:$0xf] %v839_v21  ;;  %v3146_v31 = vpack.c.bf16 %v4437_v18, %v4437_v18  ;;  %v577_v33 = vsel %vm4376_vm11, 0.0, %v545_v19 }
 0x124   : > { %962 = vst [vmem:[#allocation2 + $0x5c] sm:$0x1] %v961_v22  ;;  %v3149_v39 = vpack.c.bf16 %v577_v33, %v577_v33  ;;  %v4456_v41 = vpack.c.bf16 %v545_v19, %v544_v3  ;;  %3386 = vmatpush3.bf16.msra.mxu1 %v3863_v14  ;;  %v861_v47 = vrot.slane %v859_v29, 7  ;;  %v2881_v54 = vcombine.low %v999_v43, %v4364_v50  ;;  %v982_v55 = vld [vmem:[#allocation2 + $0x1c] sm:$0xf]  ;;  %v3871_v19 = vld [vmem:[%s4960_s2 + $0x1f0] sm:$0xff]  }
 0x125   : > { %v822_v34 = vsel %vm4318_vm10, %v814_v8, %v821_v23  ;;  %v954_v37 = vsel %vm4162_vm3, %v823_v25, %v953_v16  ;;  %v842_v51 = vshrl.u32 %v3146_v31, 16  ;;  %v845_v53 = vshll.u32 %v3146_v31, 16  ;;  %3387 = vmatprep.subr.bf16.mxu1 %v3865_v20  ;;  %v963_v3 = vld [vmem:[#allocation2 + $0x60] sm:$0xf]  ;;  %v984_v13 = vld [vmem:[#allocation2 + $0x28] sm:$0xf] }
 0x126   : > { %952 = vst [vmem:[#allocation2 + $0x4c] sm:$0xf] %v822_v34  ;;  %955 = vst [vmem:[#allocation2 + $0x50] sm:$0x1] %v954_v37  ;;  %v867_v44 = vshrl.u32 %v3149_v39, 16  ;;  %v870_v60 = vshll.u32 %v3149_v39, 16  ;;  %v515_v42 = vadd.f32 %v4275_v15, %v4312_v62  ;;  %v864_v50 = vor.u32 %v862_v30, %v861_v47 }
 0x127   : > { %v1142_v61 = vrot.slane %v3817_v28, 1  ;;  %v865_v1 = vrot.slane %v861_v47, 4  ;;  %v4470_v2 = vrot.slane %v842_v51, 7  ;;  %v1141_v6 = vrot.slane %v2881_v54, 1  ;;  %v1003_v14 = vld [vmem:[#allocation2 + $0x24] sm:$0xe] }
 0x128   : > { %v3822_v8 = vld [vmem:[#allocation2 + $0x20] ss:$0 sps:$4 sm:$0x11]   ;;  %v869_v9 = vrot.slane %v867_v44, 7  ;;  %v543_v10 = vmax.f32 %v515_v42, 0.0  ;;  %v4472_v11 = vcombine.low %v981_v59, %v982_v55  ;;  %v2883_v12 = vcombine.low %v1001_v63, %v982_v55  ;;  %3388 = vmatpush3.bf16.msra.mxu1 %v3866_v45  ;;  %v3826_v39 = vld [vmem:[%s4960_s2 + $0x48] sm:$0xff]  }
 0x129   : > { %v971_v15 = vsel %vm4304_vm9, %v864_v50, %v970_v38  ;;  %v847_v62 = vor.u32 %v845_v53, %v4470_v2  ;;  %v4478_v48 = vsel %vm1137_vm12, %v1141_v6, %v1142_v61  ;;  %v3825_v56 = vld [vmem:[#allocation2 + $0x2c] ss:$0 sps:$4 sm:$0x11]   ;;  %v4480_v16 = vld [vmem:[#allocation2 + $0x40] sm:$0xf]  ;;  %3389 = vmatprep.subr.bf16.mxu1 %v3868_v46  ;;  %v1145_v30 = vrot.slane %v3822_v8, 1 }
 0x12a   : > { %972 = vst [vmem:[#allocation2 + $0x6c] sm:$0xf] %v971_v15  ;;  %v872_v20 = vor.u32 %v870_v60, %v869_v9  ;;  %v874_v21 = vrot.slane %v869_v9, 4  ;;  %3513 = vmatprep.mubr.bf16.mxu0 %v4478_v48  ;;  %v4487_v22 = vpack.c.bf16 %v543_v10, %v4437_v18  ;;  %v3147_v23 = vpack.c.bf16 %v543_v10, %v543_v10  ;;  %v4490_v25 = vld [vmem:[#allocation2 + $0x34] sm:$0xf]  ;;  %v3823_v31 = vld [vmem:[%s4960_s2] sm:$0xff]  }
 0x12b   : > { %1460 = vmatmul.mubr.bf16.gmra.mrb[8].mxu1 %v4472_v11  ;;  %v964_v28 = vsel %vm4304_vm9, %v847_v62, %v963_v3  ;;  %v1144_v29 = vrot.slane %v2883_v12, 1  ;;  %v2885_v33 = vcombine.low %v1003_v14, %v984_v13  ;;  %v3831_v34 = vld [vmem:[#allocation2 + $0x38] ss:$0 sps:$4 sm:$0x11]   ;;  %v3872_v43 = vld [vmem:[%s4960_s2 + $0x1b0] sm:$0xff]   ;;  %v1148_v51 = vrot.slane %v3825_v56, 1 }
 0x12c   : > { %1467 = vmatprep.mubr.bf16.mxu1 %v4343_v52  ;;  %965 = vst [vmem:[#allocation2 + $0x60] sm:$0xf] %v964_v28  ;;  %v873_v18 = vsel %vm4318_vm10, %v865_v1, %v872_v20  ;;  %v975_v37 = vsel %vm4162_vm3, %v874_v21, %v974_v5  ;;  %v850_v38 = vshrl.u32 %v3147_v23, 16  ;;  %v853_v49 = vshll.u32 %v3147_v23, 16  ;;  %3390 = vmatpush3.bf16.msra.mxu1 %v3869_v36  ;;  %v1005_v53 = vld [vmem:[#allocation2 + $0x30] sm:$0xe] }
 0x12d   : > { %973 = vst [vmem:[#allocation2 + $0x70] sm:$0xf] %v873_v18  ;;  %976 = vst [vmem:[#allocation2 + $0x74] sm:$0x1] %v975_v37  ;;  %v4509_v45 = vsel %vm1137_vm12, %v1144_v29, %v1145_v30  ;;  %v1147_v47 = vrot.slane %v2885_v33, 1  ;;  %3391 = vmatprep.subr.bf16.mxu1 %v3871_v19  ;;  %v848_v59 = vrot.slane %v4470_v2, 4  ;;  %v2887_v46 = vcombine.low %v1005_v53, %v4490_v25 }
 0x12e   : > { %v1007_v54 = vld [vmem:[#allocation2 + $0x3c] sm:$0xe]  ;;  %v852_v55 = vrot.slane %v850_v38, 7  ;;  %3514 = vmatmul.mubr.bf16.vlgmr.msra.gmra.mrb[16].mxu0 %v4509_v45  ;;  %v3834_v44 = vld [vmem:[#allocation2 + $0x44] ss:$0 sps:$4 sm:$0x11]  }
 0x12f   : > { %v2889_v3 = vcombine.low %v1007_v54, %v4480_v16  ;;  %v967_v60 = vld [vmem:[#allocation2 + $0x68] sm:$0x1]  ;;  %3300 = vmatpush3.bf16.msra.mxu0 %v3823_v31  ;;  %v4516_v61 = vsel %vm1137_vm12, %v1147_v47, %v1148_v51  ;;  %v983_v63 = vld [vmem:[#allocation2 + $0x24] sm:$0xf]  ;;  %v1151_v36 = vrot.slane %v3831_v34, 1  ;;  %v3829_v5 = vld [vmem:[%s4960_s2 + $0x50] sm:$0xff]  }
 0x130   : > { %v3827_v42 = vld [vmem:[%s4960_s2 + $0x8] sm:$0xff]   ;;  %v855_v50 = vor.u32 %v853_v49, %v852_v55  ;;  %v857_v1 = vrot.slane %v852_v55, 4  ;;  %3517 = vmatprep.mubr.bf16.mxu0 %v4516_v61  ;;  %3301 = vmatprep.subr.bf16.mxu0 %v3826_v39  ;;  %v4522_v2 = vcombine.low %v983_v63, %v984_v13  ;;  %v1150_v6 = vrot.slane %v2887_v46, 1  ;;  %v3874_v9 = vld [vmem:[%s4960_s2 + $0x1f8] sm:$0xff]   ;;  %v1011_v23 = vld [vmem:[#allocation2 + $0x54] sm:$0xe] }
 0x131   : > { %v4527_v8 = vld [vmem:[#allocation2 + $0x4c] sm:$0xf]  ;;  %3392 = vmatpush3.bf16.msra.mxu1 %v3872_v43  ;;  %v3875_v10 = vld [vmem:[%s4960_s2 + $0x1b8] sm:$0xff]   ;;  %v1153_v14 = vrot.slane %v2889_v3, 1  ;;  %v1154_v15 = vrot.slane %v3834_v44, 1  ;;  %v3838_v38 = vld [vmem:[%s4960_s2 + $0x60] sm:$0xff]  }
 0x132   : > { %v856_v12 = vsel %vm4318_vm10, %v848_v59, %v855_v50  ;;  %v968_v13 = vsel %vm4162_vm3, %v857_v1, %v967_v60  ;;  %v1009_v62 = vld [vmem:[#allocation2 + $0x48] sm:$0xe]  ;;  %v4540_v56 = vld [vmem:[#allocation2 + $0x58] sm:$0xf]  ;;  %v4544_v19 = vsel %vm1137_vm12, %v1150_v6, %v1151_v36  ;;  %3393 = vmatprep.subr.bf16.mxu1 %v3874_v9  ;;  %v985_v33 = vld [vmem:[#allocation2 + $0x30] sm:$0xf] }
 0x133   : > { %1468 = vmatmul.mubr.bf16.gmra.mrb[12].mxu1 %v4522_v2  ;;  %966 = vst [vmem:[#allocation2 + $0x64] sm:$0xf] %v856_v12  ;;  %969 = vst [vmem:[#allocation2 + $0x68] sm:$0x1] %v968_v13  ;;  %3302 = vmatpush3.bf16.msra.mxu0 %v3827_v42  ;;  %v2891_v7 = vcombine.low %v1009_v62, %v4527_v8  ;;  %v3835_v21 = vld [vmem:[%s4960_s2 + $0x58] sm:$0xff]   ;;  %v2893_v28 = vcombine.low %v1011_v23, %v4540_v56  ;;  %v3844_v53 = vld [vmem:[%s4960_s2 + $0x68] sm:$0xff]  }
 0x134   : > { %1475 = vmatprep.mubr.bf16.mxu1 %v4372_v57  ;;  %v3840_v20 = vld [vmem:[#allocation2 + $0x50] ss:$0 sps:$4 sm:$0x11]   ;;  %3303 = vmatprep.subr.bf16.mxu0 %v3829_v5  ;;  %v3843_v29 = vld [vmem:[#allocation2 + $0x5c] ss:$0 sps:$4 sm:$0x11]   ;;  %v4556_v30 = vsel %vm1137_vm12, %v1153_v14, %v1154_v15  ;;  %v4563_v37 = vcombine.low %v985_v33, %v4490_v25 }
 0x135   : > { %3394 = vmatpush3.bf16.msra.mxu1 %v3875_v10  ;;  %v3836_v31 = vld [vmem:[%s4960_s2 + $0x18] sm:$0xff]   ;;  %v1156_v34 = vrot.slane %v2891_v7, 1  ;;  %v1157_v18 = vrot.slane %v3840_v20, 1  ;;  %v1159_v49 = vrot.slane %v2893_v28, 1  ;;  %v1160_v39 = vrot.slane %v3843_v29, 1  ;;  %v3841_v25 = vld [vmem:[%s4960_s2 + $0x20] sm:$0xff]  }
 0x136   : > { %3518 = vmatmul.mubr.bf16.gmra.mrb[20].mxu0 %v4544_v19  ;;  %v1013_v47 = vld [vmem:[#allocation2 + $0x60] sm:$0xe]  ;;  %v3845_v46 = vld [vmem:[%s4960_s2 + $0x28] sm:$0xff]   ;;  %v987_v3 = vld [vmem:[#allocation2 + $0x3c] sm:$0xf] }
 0x137   : > { %3304 = vmatpush3.bf16.msra.mxu0 %v3832_v17  ;;  %3521 = vmatprep.mubr.bf16.mxu0 %v4556_v30  ;;  %v4571_v51 = vsel %vm1137_vm12, %v1156_v34, %v1157_v18  ;;  %v4581_v55 = vsel %vm1137_vm12, %v1159_v49, %v1160_v39  ;;  %v4588_v44 = vcombine.low %v987_v3, %v4480_v16  ;;  %v3849_v60 = vld [vmem:[%s4960_s2 + $0x70] sm:$0xff]   ;;  %v3855_v16 = vld [vmem:[%s4960_s2 + $0x78] sm:$0xff]   ;;  %v989_v1 = vld [vmem:[#allocation2 + $0x48] sm:$0xf] }
 0x138   : > { %3305 = vmatprep.subr.bf16.mxu0 %v3835_v21  ;;  %v3852_v36 = vld [vmem:[%s4960_s2 + $0x30] sm:$0xff]   ;;  %v4612_v5 = vcombine.low %v989_v1, %v4527_v8  ;;  %v3860_v6 = vld [vmem:[%s4960_s2 + $0x80] sm:$0xff]   ;;  %v3867_v8 = vld [vmem:[%s4960_s2 + $0x88] sm:$0xff]  }
 0x139   : > { %v4617_v9 = vld [vmem:[#allocation2 + $0x4] sm:$0xf]  ;;  %v991_v12 = vld [vmem:[#allocation2 + $0x54] sm:$0xf]  ;;  %v3876_v15 = vld [vmem:[%s4960_s2 + $0x98] sm:$0xff]  }
 0x13a   : > { %v994_v43 = vld [vmem:[#allocation2 + $0x64] sm:$0xf]  ;;  %v3851_v59 = vld [vmem:[#allocation2 + $0x68] ss:$0 sps:$4 sm:$0x11]   ;;  %v2876_v13 = vcombine.low %v991_v12, %v4540_v56  ;;  %v3873_v14 = vld [vmem:[%s4960_s2 + $0x90] sm:$0xff]  }
 0x13b   : > { %1476 = vmatmul.mubr.bf16.gmra.mrb[16].mxu1 %v4563_v37  ;;  %3306 = vmatpush3.bf16.msra.mxu0 %v3836_v31  ;;  %v2895_v54 = vcombine.low %v1013_v47, %v994_v43  ;;  %v1163_v63 = vrot.slane %v3851_v59, 1  ;;  %v993_v62 = vld [vmem:[#allocation2 + $0x60] sm:$0xf]  ;;  %v3878_v17 = vld [vmem:[%s4960_s2 + $0xa8] sm:$0xff]   ;;  %v3891_v28 = vld [vmem:[%s4960_s2 + $0x230] sm:$0xff]  }
 0x13c   : > { %1483 = vmatprep.mubr.bf16.mxu1 %v4354_v26  ;;  %3307 = vmatprep.subr.bf16.mxu0 %v3838_v38  ;;  %v3877_v56 = vld [vmem:[%s4960_s2 + $0xa0] sm:$0xff]   ;;  %v3892_v29 = vld [vmem:[%s4960_s2 + $0x238] sm:$0xff]   ;;  %v1015_v31 = vld [vmem:[#allocation2 + $0x6c] sm:$0xe] }
 0x13d   : > { %v1162_v42 = vrot.slane %v2895_v54, 1  ;;  %v3883_v7 = vld [vmem:[%s4960_s2 + $0x200] sm:$0xff]   ;;  %v3893_v34 = vld [vmem:[#allocation2 + $0x74] ss:$0 sps:$4 sm:$0x11]   ;;  %v3897_v38 = vld [vmem:[%s4961_s3 + $0x18] sm:$0xff]  }
 0x13e   : > { %3522 = vmatmul.mubr.bf16.gmra.mrb[24].mxu0 %v4571_v51  ;;  %v3889_v23 = vld [vmem:[%s4960_s2 + $0x220] sm:$0xff]   ;;  %v3899_v54 = vld [vmem:[%s4961_s3 + $0x28] sm:$0xff]   ;;  %v3900_v59 = vld [vmem:[%s4961_s3 + $0x30] sm:$0xff]  }
 0x13f   : > { %3308 = vmatpush3.bf16.msra.mxu0 %v3841_v25  ;;  %3525 = vmatprep.mubr.bf16.mxu0 %v4581_v55  ;;  %v4604_v50 = vsel %vm1137_vm12, %v1162_v42, %v1163_v63  ;;  %v3898_v49 = vld [vmem:[%s4961_s3 + $0x20] sm:$0xff]  }
 0x140   : > { %3309 = vmatprep.subr.bf16.mxu0 %v3844_v53 }
 0x143   : > { %1484 = vmatmul.mubr.bf16.gmra.mrb[20].mxu1 %v4588_v44  ;;  %3310 = vmatpush3.bf16.msra.mxu0 %v3845_v46 }
 0x144   : > { %1491 = vmatprep.mubr.bf16.mxu1 %v4410_v32  ;;  %3311 = vmatprep.subr.bf16.mxu0 %v3849_v60 }
 0x146   : > { %3526 = vmatmul.mubr.bf16.gmra.mrb[28].mxu0 %v4604_v50 }
 0x147   : > { %3312 = vmatpush3.bf16.msra.mxu0 %v3852_v36  ;;  %2999 = vmatprep.mubr.msk.bf16.mxu0 %vm2997_vm14, %v4295_v40  ;;  %v977_v40 = vld [vmem:[#allocation2] sm:$0xf] }
 0x148   : > { %3313 = vmatprep.subr.bf16.mxu0 %v3855_v16  ;;  %v2869_v10 = vcombine.low %v977_v40, %v4617_v9 }
 0x14b   : > { %1492 = vmatmul.mubr.bf16.gmra.mrb[24].mxu1 %v4612_v5  ;;  %3314 = vmatpush3.bf16.msra.mxu0 %v3856_v24 }
 0x14c   : > { %1499 = vmatprep.mubr.bf16.mxu1 %v4405_v27  ;;  %3529 = vmatprep.subr.bf16.mxu0 %v3860_v6 }
 0x14e   : > { %1790 = vmatmul.mubr.bf16.vlgmr.msra.gmra.mrb[32].mxu0 %v2869_v10 }
 0x14f   : > { %3530 = vmatpush3.bf16.msra.mxu0 %v3860_v6  ;;  %1797 = vmatprep.mubr.bf16.mxu0 %v4290_v35  ;;  %v2877_v35 = vcombine.low %v993_v62, %v994_v43 }
 0x150   : > { %3531 = vmatprep.subr.bf16.mxu0 %v3867_v8 }
 0x153   : > { %1500 = vmatmul.mubr.bf16.gmra.mrb[28].mxu1 %v2876_v13  ;;  %3532 = vmatpush3.bf16.msra.mxu0 %v3867_v8 }
 0x154   : > { %1507 = vmatprep.mubr.bf16.mxu1 %v4487_v22  ;;  %3533 = vmatprep.subr.bf16.mxu0 %v3873_v14 }
 0x156   : > { %1798 = vmatmul.mubr.bf16.gmra.mrb[36].mxu0 %v4389_v4  ;;  %v3879_v4 = vld [vmem:[%s4960_s2 + $0xb0] sm:$0xff]  }
 0x157   : > { %1805 = vmatprep.mubr.bf16.mxu0 %v4351_v0  ;;  %3534 = vmatpush3.bf16.msra.mxu0 %v3873_v14 }
 0x158   : > { %3535 = vmatprep.subr.bf16.mxu0 %v3876_v15 }
 0x15b   : > { %1508 = vmatmul.mubr.bf16.gmra.mrb[32].mxu1 %v2877_v35  ;;  %3536 = vmatpush3.bf16.msra.mxu0 %v3876_v15 }
 0x15c   : > { %2176 = vmatprep.mubr.bf16.mxu1 %v4351_v0  ;;  %3537 = vmatprep.subr.bf16.mxu0 %v3877_v56  ;;  %v3880_v0 = vld [vmem:[%s4960_s2 + $0xb8] sm:$0xff]  }
 0x15e   : > { %1806 = vmatmul.mubr.bf16.gmra.mrb[40].mxu0 %v4472_v11 }
 0x15f   : > { %1813 = vmatprep.mubr.bf16.mxu0 %v4343_v52  ;;  %3538 = vmatpush3.bf16.msra.mxu0 %v3877_v56 }
 0x160   : > { %3539 = vmatprep.subr.bf16.mxu0 %v3878_v17 }
 0x163   : > { %2177 = vmatmul.mubr.bf16.vlgmr.msra.gmra.mrb[36].mxu1 %v4472_v11  ;;  %3540 = vmatpush3.bf16.msra.mxu0 %v3878_v17  ;;  %v3882_v11 = vld [vmem:[#allocation2 + $0x8] ss:$0 sps:$4 sm:$0x11]  }
 0x164   : > { %2184 = vmatprep.mubr.bf16.mxu1 %v4343_v52  ;;  %3541 = vmatprep.subr.bf16.mxu0 %v3879_v4  ;;  %v997_v52 = vld [vmem:[#allocation2] sm:$0xe] }
 0x166   : > { %1814 = vmatmul.mubr.bf16.gmra.mrb[44].mxu0 %v4522_v2 }
 0x167   : > { %1821 = vmatprep.mubr.bf16.mxu0 %v4372_v57  ;;  %3542 = vmatpush3.bf16.msra.mxu0 %v3879_v4 }
 0x168   : > { %3543 = vmatprep.subr.bf16.mxu0 %v3880_v0 }
 0x16b   : > { %2185 = vmatmul.mubr.bf16.gmra.mrb[40].mxu1 %v4522_v2  ;;  %3544 = vmatpush3.bf16.msra.mxu0 %v3880_v0 }
 0x16c   : > { %2192 = vmatprep.mubr.bf16.mxu1 %v4372_v57  ;;  %3561 = vmatprep.subr.bf16.mxu0 %v3883_v7  ;;  %v2879_v57 = vcombine.low %v997_v52, %v4617_v9 }
 0x16e   : > { %1822 = vmatmul.mubr.bf16.gmra.mrb[48].mxu0 %v4563_v37  ;;  %v1138_v2 = vrot.slane %v2879_v57, 1 }
 0x16f   : > { %1829 = vmatprep.mubr.bf16.mxu0 %v4354_v26 }
 0x173   : > { %2193 = vmatmul.mubr.bf16.gmra.mrb[44].mxu1 %v4563_v37  ;;  %v1166_v37 = vrot.slane %v3893_v34, 1 }
 0x174   : > { %2200 = vmatprep.mubr.bf16.mxu1 %v4354_v26  ;;  %v1139_v26 = vrot.slane %v3882_v11, 1 }
 0x176   : > { %1830 = vmatmul.mubr.bf16.gmra.mrb[52].mxu0 %v4588_v44  ;;  %v1140_v20 = vsel %vm1137_vm12, %v1138_v2, %v1139_v26 }
 0x177   : > { %1837 = vmatprep.mubr.bf16.mxu0 %v4410_v32 }
 0x17b   : > { %2201 = vmatmul.mubr.bf16.gmra.mrb[48].mxu1 %v4588_v44 }
 0x17c   : > { %2208 = vmatprep.mubr.bf16.mxu1 %v4410_v32  ;;  %v3884_v32 = vld [vmem:[%s4960_s2 + $0x208] sm:$0xff]  }
 0x17e   : > { %1838 = vmatmul.mubr.bf16.gmra.mrb[56].mxu0 %v4612_v5 }
 0x17f   : > { %1845 = vmatprep.mubr.bf16.mxu0 %v4405_v27 }
 0x183   : > { %2209 = vmatmul.mubr.bf16.gmra.mrb[52].mxu1 %v4612_v5  ;;  %v3901_v5 = vld [vmem:[%s4961_s3 + $0x38] sm:$0xff]  }
 0x184   : > { %2216 = vmatprep.mubr.bf16.mxu1 %v4405_v27  ;;  %v3885_v27 = vld [vmem:[%s4960_s2 + $0x210] sm:$0xff]  }
 0x186   : > { %1846 = vmatmul.mubr.bf16.gmra.mrb[60].mxu0 %v2876_v13 }
 0x187   : > { %3545 = vmatprep.mubr.bf16.mxu0 %v1140_v20 }
 0x18b   : > { %2217 = vmatmul.mubr.bf16.gmra.mrb[56].mxu1 %v2876_v13 }
 0x18c   : > { %2224 = vmatprep.mubr.bf16.mxu1 %v4487_v22  ;;  %v995_v22 = vld [vmem:[#allocation2 + $0x6c] sm:$0xf] }
 0x18e   : > { %3546 = vmatmul.mubr.bf16.vlgmr.msra.gmra.mrb[16].mxu0 %v4478_v48  ;;  %v996_v48 = vld [vmem:[#allocation2 + $0x70] sm:$0xf] }
 0x18f   : > { %3562 = vmatpush3.bf16.msra.mxu0 %v3883_v7  ;;  %3549 = vmatprep.mubr.bf16.mxu0 %v4509_v45  ;;  %v2878_v21 = vcombine.low %v995_v22, %v996_v48  ;;  %v2897_v33 = vcombine.low %v1015_v31, %v996_v48 }
 0x190   : > { %3563 = vmatprep.subr.bf16.mxu0 %v3884_v32 }
 0x191   : > { %v1165_v18 = vrot.slane %v2897_v33, 1 }
 0x193   : > { %2225 = vmatmul.mubr.bf16.gmra.mrb[60].mxu1 %v2877_v35  ;;  %3564 = vmatpush3.bf16.msra.mxu0 %v3884_v32 }
 0x194   : > { %3076 = vmatprep.mubr.msk.bf16.mxu1 %vm3074_vm0, %v4456_v41  ;;  %3565 = vmatprep.subr.bf16.mxu0 %v3885_v27  ;;  %v3890_v41 = vld [vmem:[%s4960_s2 + $0x228] sm:$0xff]  }
 0x196   : > { %3550 = vmatmul.mubr.bf16.gmra.mrb[20].mxu0 %v4516_v61 }
 0x197   : > { %3566 = vmatpush3.bf16.msra.mxu0 %v3885_v27  ;;  %3553 = vmatprep.mubr.bf16.mxu0 %v4544_v19 }
 0x198   : > { %3567 = vmatprep.subr.bf16.mxu0 %v3886_v58 }
 0x19b   : > { %2233 = vmatmul.mubr.bf16.gmra.mrb[64].mxu1 %v2878_v21  ;;  %3568 = vmatpush3.bf16.msra.mxu0 %v3886_v58 }
 0x19c   : > { %3569 = vmatprep.subr.bf16.mxu0 %v3889_v23 }
 0x19e   : > { %3554 = vmatmul.mubr.bf16.gmra.mrb[24].mxu0 %v4556_v30 }
 0x19f   : > { %3570 = vmatpush3.bf16.msra.mxu0 %v3889_v23  ;;  %3557 = vmatprep.mubr.bf16.mxu0 %v4571_v51 }
 0x1a0   : > { %3571 = vmatprep.subr.bf16.mxu0 %v3890_v41 }
 0x1a3   : > { %3572 = vmatpush3.bf16.msra.mxu0 %v3890_v41 }
 0x1a4   : > { %3573 = vmatprep.subr.bf16.mxu0 %v3891_v28 }
 0x1a6   : > { %3558 = vmatmul.mubr.bf16.gmra.mrb[28].mxu0 %v4581_v55 }
 0x1a7   : > { %3574 = vmatpush3.bf16.msra.mxu0 %v3891_v28  ;;  %3577 = vmatprep.mubr.bf16.mxu0 %v4509_v45  ;;  %v1167_v45 = vsel %vm1137_vm12, %v1165_v18, %v1166_v37 }
 0x1a8   : > { %3575 = vmatprep.subr.bf16.mxu0 %v3892_v29 }
 0x1ab   : > { %3576 = vmatpush3.bf16.msra.mxu0 %v3892_v29 }
 0x1ae   : > { %3578 = vmatmul.mubr.bf16.vlgmr.msra.gmra.mrb[16].mxu0 %v4516_v61  ;;  %v3894_v61 = vld [vmem:[%s4961_s3] sm:$0xff]  }
 0x1af   : > { %3581 = vmatprep.mubr.bf16.mxu0 %v4544_v19  ;;  %3593 = vmatprep.subr.bf16.mxu1 %v3894_v61  ;;  %v3895_v19 = vld [vmem:[%s4961_s3 + $0x8] sm:$0xff]  }
 0x1b0   : > { %3594 = vmatpush3.bf16.msra.mxu1 %v3894_v61 }
 0x1b1   : > { %3595 = vmatprep.subr.bf16.mxu1 %v3895_v19 }
 0x1b4   : > { %3596 = vmatpush3.bf16.msra.mxu1 %v3895_v19 }
 0x1b6   : > { %3582 = vmatmul.mubr.bf16.gmra.mrb[20].mxu0 %v4556_v30  ;;  %v3896_v30 = vld [vmem:[%s4961_s3 + $0x10] sm:$0xff]  }
 0x1b7   : > { %3585 = vmatprep.mubr.bf16.mxu0 %v4571_v51  ;;  %3597 = vmatprep.subr.bf16.mxu1 %v3896_v30 }
 0x1b8   : > { %3598 = vmatpush3.bf16.msra.mxu1 %v3896_v30 }
 0x1b9   : > { %3599 = vmatprep.subr.bf16.mxu1 %v3897_v38 }
 0x1bc   : > { %3600 = vmatpush3.bf16.msra.mxu1 %v3897_v38 }
 0x1bd   : > { %3601 = vmatprep.subr.bf16.mxu1 %v3898_v49 }
 0x1be   : > { %3586 = vmatmul.mubr.bf16.gmra.mrb[24].mxu0 %v4581_v55 }
 0x1bf   : > { %3589 = vmatprep.mubr.bf16.mxu0 %v4604_v50 }
 0x1c0   : > { %3602 = vmatpush3.bf16.msra.mxu1 %v3898_v49 }
 0x1c1   : > { %3603 = vmatprep.subr.bf16.mxu1 %v3899_v54 }
 0x1c4   : > { %3604 = vmatpush3.bf16.msra.mxu1 %v3899_v54 }
 0x1c5   : > { %3605 = vmatprep.subr.bf16.mxu1 %v3900_v59 }
 0x1c6   : > { %3590 = vmatmul.mubr.bf16.gmra.mrb[28].mxu0 %v1167_v45 }
 0x1c8   : > { %3606 = vmatpush3.bf16.msra.mxu1 %v3900_v59 }
 0x1c9   : > { %3607 = vmatprep.subr.bf16.mxu1 %v3901_v5 }
 0x1cc   : > { %3608 = vmatpush3.bf16.msra.mxu1 %v3901_v5 }
 0x1ea   : > { %v3235_v39 = vpop.f32.mrb[4].mxu1 }
 0x1eb   : > { %v3236_v43 = vpop.f32.mrb[5].mxu1 }
 0x1ec   : > { %v3237_v47 = vadd.f32 %v3236_v43, %v3235_v39  ;;  %v3238_v51 = vpop.f32.mrb[6].mxu1 }
 0x1ed   : > { %v3239_v25 = vpop.f32.mrb[7].mxu1 }
 0x1ee   : > { %v3240_v53 = vadd.f32 %v3239_v25, %v3238_v51 }
 0x1fe   : > { %v3241_v55 = vpop.f32.mrb[8].mxu1 }
 0x1ff   : > { %v3242_v46 = vpop.f32.mrb[9].mxu1 }
 0x200   : > { %v3243_v3 = vadd.f32 %v3242_v46, %v3241_v55  ;;  %v3244_v44 = vpop.f32.mrb[10].mxu1 }
 0x201   : > { %v3245_v60 = vpop.f32.mrb[11].mxu1 }
 0x202   : > { %v3246_v42 = vadd.f32 %v3245_v60, %v3244_v44 }
 0x206   : > { %v3247_v63 = vpop.f32.mrb[12].mxu1 }
 0x207   : > { %v3248_v36 = vpop.f32.mrb[13].mxu1 }
 0x208   : > { %v3249_v16 = vadd.f32 %v3248_v36, %v3247_v63  ;;  %v3250_v50 = vpop.f32.mrb[14].mxu1 }
 0x209   : > { %v3251_v24 = vpop.f32.mrb[15].mxu1 }
 0x20a   : > { %v3252_v1 = vadd.f32 %v3251_v24, %v3250_v50 }
 0x20e   : > { %v3253_v6 = vpop.f32.mrb[16].mxu1 }
 0x20f   : > { %v3254_v9 = vpop.f32.mrb[17].mxu1 }
 0x210   : > { %v4738_v40 = vadd.f32 %v3254_v9, %v3253_v6  ;;  %v3256_v10 = vpop.f32.mrb[18].mxu1 }
 0x211   : > { %v3257_v8 = vpop.f32.mrb[19].mxu1 }
 0x212   : > { %v4740_v12 = vadd.f32 %v3257_v8, %v3256_v10 }
 0x216   : > { %v3259_v13 = vpop.f32.mrb[20].mxu1 }
 0x217   : > { %v3260_v14 = vpop.f32.mrb[21].mxu1 }
 0x218   : > { %v4742_v15 = vadd.f32 %v3260_v14, %v3259_v13  ;;  %v3262_v62 = vpop.f32.mrb[22].mxu1 }
 0x219   : > { %v3263_v35 = vpop.f32.mrb[23].mxu1 }
 0x21a   : > { %v4744_v56 = vadd.f32 %v3263_v35, %v3262_v62 }
 0x21e   : > { %v3265_v17 = vpop.f32.mrb[24].mxu1 }
 0x21f   : > { %v3266_v4 = vpop.f32.mrb[25].mxu1 }
 0x220   : > { %v4746_v0 = vadd.f32 %v3266_v4, %v3265_v17  ;;  %v3268_v7 = vpop.f32.mrb[26].mxu1 }
 0x221   : > { %v3269_v52 = vpop.f32.mrb[27].mxu1  ;;  %v3315_v11 = vpop.f32.mrb[32].mxu0 }
 0x222   : > { %v4748_v57 = vadd.f32 %v3269_v52, %v3268_v7  ;;  %v3316_v2 = vpop.f32.mrb[33].mxu0 }
 0x223   : > { %v3317_v26 = vadd.f32 %v3316_v2, %v3315_v11  ;;  %v3318_v20 = vpop.f32.mrb[34].mxu0 }
 0x224   : > { %v3319_v32 = vpop.f32.mrb[35].mxu0 }
 0x225   : > { %v3630_v27 = vadd.f32 %v3317_v26, %v3237_v47  ;;  %v3320_v58 = vadd.f32 %v3319_v32, %v3318_v20 }
 0x226   : > { %v3271_v22 = vpop.f32.mrb[28].mxu1 }
 0x227   : > { %v3272_v48 = vpop.f32.mrb[29].mxu1  ;;  %v3636_v21 = vadd.f32 %v3320_v58, %v3240_v53 }
 0x228   : > { %v4750_v23 = vadd.f32 %v3272_v48, %v3271_v22  ;;  %v3274_v41 = vpop.f32.mrb[30].mxu1 }
 0x229   : > { %v3275_v28 = vpop.f32.mrb[31].mxu1  ;;  %v3321_v31 = vpop.f32.mrb[36].mxu0 }
 0x22a   : > { %v4752_v29 = vadd.f32 %v3275_v28, %v3274_v41  ;;  %v3322_v33 = vpop.f32.mrb[37].mxu0 }
 0x22b   : > { %v3323_v34 = vadd.f32 %v3322_v33, %v3321_v31  ;;  %v3324_v18 = vpop.f32.mrb[38].mxu0 }
 0x22c   : > { %v3325_v37 = vpop.f32.mrb[39].mxu0 }
 0x22d   : > { %v3627_v45 = vadd.f32 %v3323_v34, %v3243_v3  ;;  %v3326_v61 = vadd.f32 %v3325_v37, %v3324_v18 }
 0x22e   : > { %v3277_v19 = vpop.f32.mrb[32].mxu1 }
 0x22f   : > { %v3278_v30 = vpop.f32.mrb[33].mxu1  ;;  %v3633_v38 = vadd.f32 %v3326_v61, %v3246_v42 }
 0x230   : > { %v4754_v49 = vadd.f32 %v3278_v30, %v3277_v19  ;;  %v3280_v39 = vpop.f32.mrb[34].mxu1 }
 0x231   : > { %v3281_v43 = vpop.f32.mrb[35].mxu1  ;;  %v3327_v51 = vpop.f32.mrb[40].mxu0 }
 0x232   : > { %v4756_v47 = vadd.f32 %v3281_v43, %v3280_v39  ;;  %v3328_v25 = vpop.f32.mrb[41].mxu0 }
 0x233   : > { %v3329_v53 = vadd.f32 %v3328_v25, %v3327_v51  ;;  %v3330_v54 = vpop.f32.mrb[42].mxu0 }
 0x234   : > { %v3331_v59 = vpop.f32.mrb[43].mxu0 }
 0x235   : > { %v3642_v55 = vadd.f32 %v3329_v53, %v3249_v16  ;;  %v3332_v46 = vadd.f32 %v3331_v59, %v3330_v54 }
 0x236   : > { %v3395_v44 = vpop.f32.mrb[36].mxu1 }
 0x237   : > { %v3396_v60 = vpop.f32.mrb[37].mxu1  ;;  %v3648_v3 = vadd.f32 %v3332_v46, %v3252_v1 }
 0x238   : > { %v3397_v63 = vadd.f32 %v3396_v60, %v3395_v44  ;;  %v3398_v36 = vpop.f32.mrb[38].mxu1 }
 0x239   : > { %v3399_v50 = vpop.f32.mrb[39].mxu1  ;;  %v3333_v42 = vpop.f32.mrb[44].mxu0 }
 0x23a   : > { %v3400_v24 = vadd.f32 %v3399_v50, %v3398_v36  ;;  %v4758_v5 = vadd.f32 %v3630_v27, %v3397_v63  ;;  %v3334_v6 = vpop.f32.mrb[45].mxu0 }
 0x23b   : > { %v3335_v9 = vadd.f32 %v3334_v6, %v3333_v42  ;;  %v3336_v10 = vpop.f32.mrb[46].mxu0 }
 0x23c   : > { %v4760_v8 = vadd.f32 %v3636_v21, %v3400_v24  ;;  %v3337_v13 = vpop.f32.mrb[47].mxu0 }
 0x23d   : > { %v3639_v14 = vadd.f32 %v3335_v9, %v4738_v40  ;;  %v3338_v16 = vadd.f32 %v3337_v13, %v3336_v10 }
 0x23e   : > { %v3401_v62 = vpop.f32.mrb[40].mxu1 }
 0x23f   : > { %v3402_v35 = vpop.f32.mrb[41].mxu1  ;;  %v3645_v1 = vadd.f32 %v3338_v16, %v4740_v12 }
 0x240   : > { %v3403_v17 = vadd.f32 %v3402_v35, %v3401_v62  ;;  %v3404_v4 = vpop.f32.mrb[42].mxu1 }
 0x241   : > { %v3405_v7 = vpop.f32.mrb[43].mxu1  ;;  %v3339_v52 = vpop.f32.mrb[48].mxu0 }
 0x242   : > { %v3406_v11 = vadd.f32 %v3405_v7, %v3404_v4  ;;  %v4764_v2 = vadd.f32 %v3627_v45, %v3403_v17  ;;  %v3340_v26 = vpop.f32.mrb[49].mxu0 }
 0x243   : > { %v3341_v20 = vadd.f32 %v3340_v26, %v3339_v52  ;;  %v3342_v32 = vpop.f32.mrb[50].mxu0 }
 0x244   : > { %v4766_v27 = vadd.f32 %v3633_v38, %v3406_v11  ;;  %v3343_v58 = vpop.f32.mrb[51].mxu0 }
 0x245   : > { %v3654_v40 = vadd.f32 %v3341_v20, %v4742_v15  ;;  %v3344_v22 = vadd.f32 %v3343_v58, %v3342_v32 }
 0x246   : > { %v3407_v48 = vpop.f32.mrb[44].mxu1 }
 0x247   : > { %v3408_v21 = vpop.f32.mrb[45].mxu1  ;;  %v3660_v12 = vadd.f32 %v3344_v22, %v4744_v56 }
 0x248   : > { %v3409_v41 = vadd.f32 %v3408_v21, %v3407_v48  ;;  %v3410_v28 = vpop.f32.mrb[46].mxu1 }
 0x249   : > { %v3411_v31 = vpop.f32.mrb[47].mxu1  ;;  %v3345_v33 = vpop.f32.mrb[52].mxu0 }
 0x24a   : > { %v3412_v34 = vadd.f32 %v3411_v31, %v3410_v28  ;;  %v4770_v18 = vadd.f32 %v3642_v55, %v3409_v41  ;;  %v3346_v37 = vpop.f32.mrb[53].mxu0 }
 0x24b   : > { %v3347_v45 = vadd.f32 %v3346_v37, %v3345_v33  ;;  %v3348_v61 = vpop.f32.mrb[54].mxu0 }
 0x24c   : > { %v4772_v19 = vadd.f32 %v3648_v3, %v3412_v34  ;;  %v3349_v30 = vpop.f32.mrb[55].mxu0 }
 0x24d   : > { %v3651_v15 = vadd.f32 %v3347_v45, %v4746_v0  ;;  %v3350_v38 = vadd.f32 %v3349_v30, %v3348_v61 }
 0x24e   : > { %v3413_v39 = vpop.f32.mrb[48].mxu1 }
 0x24f   : > { %v3414_v43 = vpop.f32.mrb[49].mxu1  ;;  %v3657_v56 = vadd.f32 %v3350_v38, %v4748_v57 }
 0x250   : > { %v3415_v51 = vadd.f32 %v3414_v43, %v3413_v39  ;;  %v3416_v25 = vpop.f32.mrb[50].mxu1  ;;  %v4797_v39 = vld [vmem:[%s4963_s5] ss:$0 sm:$0xff] }
 0x251   : > { %v3417_v53 = vpop.f32.mrb[51].mxu1  ;;  %v3351_v54 = vpop.f32.mrb[56].mxu0 }
 0x252   : > { %v3418_v59 = vadd.f32 %v3417_v53, %v3416_v25  ;;  %v4776_v55 = vadd.f32 %v3639_v14, %v3415_v51  ;;  %v3352_v46 = vpop.f32.mrb[57].mxu0 }
 0x253   : > { %v3353_v44 = vadd.f32 %v3352_v46, %v3351_v54  ;;  %v3354_v60 = vpop.f32.mrb[58].mxu0 }
 0x254   : > { %v4778_v3 = vadd.f32 %v3645_v1, %v3418_v59  ;;  %v3355_v63 = vpop.f32.mrb[59].mxu0 }
 0x255   : > { %v3666_v0 = vadd.f32 %v3353_v44, %v4750_v23  ;;  %v3356_v36 = vadd.f32 %v3355_v63, %v3354_v60 }
 0x256   : > { %v3419_v50 = vpop.f32.mrb[52].mxu1 }
 0x257   : > { %v3420_v42 = vpop.f32.mrb[53].mxu1  ;;  %v3672_v57 = vadd.f32 %v3356_v36, %v4752_v29 }
 0x258   : > { %v3421_v24 = vadd.f32 %v3420_v42, %v3419_v50  ;;  %v3422_v6 = vpop.f32.mrb[54].mxu1 }
 0x259   : > { %v3423_v9 = vpop.f32.mrb[55].mxu1  ;;  %v3357_v10 = vpop.f32.mrb[60].mxu0 }
 0x25a   : > { %v3424_v13 = vadd.f32 %v3423_v9, %v3422_v6  ;;  %v4782_v14 = vadd.f32 %v3654_v40, %v3421_v24  ;;  %v3358_v16 = vpop.f32.mrb[61].mxu0 }
 0x25b   : > { %v3359_v62 = vadd.f32 %v3358_v16, %v3357_v10  ;;  %v3360_v35 = vpop.f32.mrb[62].mxu0 }
 0x25c   : > { %v4784_v1 = vadd.f32 %v3660_v12, %v3424_v13  ;;  %v3361_v17 = vpop.f32.mrb[63].mxu0 }
 0x25d   : > { %v3663_v23 = vadd.f32 %v3359_v62, %v4754_v49  ;;  %v3362_v4 = vadd.f32 %v3361_v17, %v3360_v35 }
 0x25e   : > { %v3425_v7 = vpop.f32.mrb[56].mxu1 }
 0x25f   : > { %v3426_v52 = vpop.f32.mrb[57].mxu1  ;;  %v3669_v29 = vadd.f32 %v3362_v4, %v4756_v47 }
 0x260   : > { %v3427_v11 = vadd.f32 %v3426_v52, %v3425_v7  ;;  %v3428_v26 = vpop.f32.mrb[58].mxu1 }
 0x261   : > { %v3429_v20 = vpop.f32.mrb[59].mxu1 }
 0x262   : > { %v3430_v32 = vadd.f32 %v3429_v20, %v3428_v26  ;;  %v3652_v58 = vadd.f32 %v3651_v15, %v3427_v11 }
 0x264   : > { %v3658_v40 = vadd.f32 %v3657_v56, %v3430_v32 }
 0x266   : > { %v3431_v22 = vpop.f32.mrb[60].mxu1 }
 0x267   : > { %v3432_v48 = vpop.f32.mrb[61].mxu1 }
 0x268   : > { %v3433_v21 = vadd.f32 %v3432_v48, %v3431_v22  ;;  %v3434_v41 = vpop.f32.mrb[62].mxu1 }
 0x269   : > { %v3435_v12 = vpop.f32.mrb[63].mxu1 }
 0x26a   : > { %v3436_v28 = vadd.f32 %v3435_v12, %v3434_v41  ;;  %v4788_v31 = vadd.f32 %v3666_v0, %v3433_v21 }
 0x26c   : > { %v4790_v49 = vadd.f32 %v3672_v57, %v3436_v28 }
 0x26e   : > { %v3437_v33 = vpop.f32.mrb[64].mxu1 }
 0x26f   : > { %v3438_v34 = vpop.f32.mrb[65].mxu1 }
 0x270   : > { %v3439_v37 = vadd.f32 %v3438_v34, %v3437_v33  ;;  %v3440_v47 = vpop.f32.mrb[66].mxu1 }
 0x271   : > { %v3441_v45 = vpop.f32.mrb[67].mxu1 }
 0x272   : > { %v3442_v61 = vadd.f32 %v3441_v45, %v3440_v47  ;;  %v3664_v30 = vadd.f32 %v3663_v23, %v3439_v37 }
 0x274   : > { %v4792_v38 = vadd.f32 %v3669_v29, %v3442_v61 }
 0x281   : > { %v3579_v15 = vpop.f32.mrb[16].mxu0 }
 0x282   : > { %v3629_v43 = vadd.f32 %v4764_v2, %v3579_v15  ;;  %v2275_v56 = vpop.f32.mrb[17].mxu0 }
 0x283   : > { %v3632_v51 = vadd.f32 %v4758_v5, %v2275_v56  ;;  %v3580_v25 = vpop.f32.mrb[18].mxu0 }
 0x284   : > { %v2363_v53 = vadd.f32 %v3629_v43, %v4797_v39  ;;  %v3635_v54 = vadd.f32 %v4766_v27, %v3580_v25  ;;  %v2278_v59 = vpop.f32.mrb[19].mxu0 }
 0x285   : > { %v2361_v46 = vadd.f32 %v3632_v51, %v4797_v39  ;;  %v3638_v44 = vadd.f32 %v4760_v8, %v2278_v59 }
 0x286   : > { %v2364_v60 = vadd.f32 %v3635_v54, %v4797_v39  ;;  %v2379_v0 = vmax.f32 %v2363_v53, 0.0 }
 0x287   : > { %v2362_v63 = vadd.f32 %v3638_v44, %v4797_v39  ;;  %v2377_v2 = vmax.f32 %v2361_v46, 0.0 }
 0x288   : > { %v2380_v36 = vmax.f32 %v2364_v60, 0.0  ;;  %v3201_v60 = vld [vmem:[%s4124_s20 + $0x10] sm:$0xff]  }
 0x289   : > { %v2378_v50 = vmax.f32 %v2362_v63, 0.0  ;;  %v3583_v42 = vpop.f32.mrb[20].mxu0  ;;  %v3200_v63 = vld [vmem:[%s4124_s20 + $0x8] sm:$0xff]  }
 0x28a   : > { %v2394_v5 = vpack.c.bf16 %v2380_v36, %v2379_v0  ;;  %v3641_v57 = vadd.f32 %v4776_v55, %v3583_v42  ;;  %v2291_v24 = vpop.f32.mrb[21].mxu0  ;;  %v3174_v0 = vunpack.c.l.bf16 %v3201_v60  ;;  %v3170_v36 = vunpack.c.l.bf16 %v3200_v63 }
 0x28b   : > { %v3644_v27 = vadd.f32 %v4770_v18, %v2291_v24  ;;  %v3584_v6 = vpop.f32.mrb[22].mxu0  ;;  %v2393_v9 = vpack.c.bf16 %v2378_v50, %v2377_v2  ;;  %v3175_v42 = vunpack.c.h.bf16 %v3201_v60  ;;  %v3171_v24 = vunpack.c.h.bf16 %v3200_v63 }
 0x28c   : > { %v2367_v10 = vadd.f32 %v3641_v57, %v4797_v39  ;;  %v3647_v8 = vadd.f32 %v4778_v3, %v3584_v6  ;;  %v2294_v13 = vpop.f32.mrb[23].mxu0 }
 0x28d   : > { %v2365_v16 = vadd.f32 %v3644_v27, %v4797_v39  ;;  %v3650_v62 = vadd.f32 %v4772_v19, %v2294_v13  ;;  %3609 = vmatprep.mubr.bf16.mxu1 %v2393_v9  ;;  %v3203_v13 = vld [vmem:[%s4124_s20 + $0x20] sm:$0xff]  }
 0x28e   : > { %v2368_v35 = vadd.f32 %v3647_v8, %v4797_v39  ;;  %3610 = vmatmul.mubr.bf16.vlgmr.msra.gmra.mrb[68].mxu1 %v2394_v5  ;;  %v2383_v17 = vmax.f32 %v2367_v10, 0.0 }
 0x28f   : > { %v2366_v55 = vadd.f32 %v3650_v62, %v4797_v39  ;;  %v2381_v18 = vmax.f32 %v2365_v16, 0.0 }
 0x290   : > { %v2384_v23 = vmax.f32 %v2368_v35, 0.0  ;;  %v3202_v35 = vld [vmem:[%s4124_s20 + $0x18] sm:$0xff]  }
 0x291   : > { %v2382_v4 = vmax.f32 %v2366_v55, 0.0  ;;  %v3587_v7 = vpop.f32.mrb[24].mxu0 }
 0x292   : > { %v3653_v52 = vadd.f32 %v3652_v58, %v3587_v7  ;;  %v2307_v29 = vpop.f32.mrb[25].mxu0  ;;  %v2396_v11 = vpack.c.bf16 %v2384_v23, %v2383_v17 }
 0x293   : > { %v3656_v3 = vadd.f32 %v4782_v14, %v2307_v29  ;;  %v3588_v26 = vpop.f32.mrb[26].mxu0  ;;  %v2395_v20 = vpack.c.bf16 %v2382_v4, %v2381_v18  ;;  %v3182_v4 = vunpack.c.l.bf16 %v3203_v13 }
 0x294   : > { %v2371_v19 = vadd.f32 %v3653_v52, %v4797_v39  ;;  %v3659_v32 = vadd.f32 %v3658_v40, %v3588_v26  ;;  %v2310_v22 = vpop.f32.mrb[27].mxu0 }
 0x295   : > { %v2369_v48 = vadd.f32 %v3656_v3, %v4797_v39  ;;  %v3662_v21 = vadd.f32 %v4784_v1, %v2310_v22  ;;  %3613 = vmatprep.mubr.bf16.mxu1 %v2395_v20 }
 0x296   : > { %v2372_v41 = vadd.f32 %v3659_v32, %v4797_v39  ;;  %3614 = vmatmul.mubr.bf16.gmra.mrb[72].mxu1 %v2396_v11  ;;  %v2387_v12 = vmax.f32 %v2371_v19, 0.0  ;;  %v3178_v11 = vunpack.c.l.bf16 %v3202_v35  ;;  %v3183_v19 = vunpack.c.h.bf16 %v3203_v13 }
 0x297   : > { %v2370_v58 = vadd.f32 %v3662_v21, %v4797_v39  ;;  %v2385_v33 = vmax.f32 %v2369_v48, 0.0  ;;  %v3179_v21 = vunpack.c.h.bf16 %v3202_v35 }
 0x298   : > { %v2388_v28 = vmax.f32 %v2372_v41, 0.0 }
 0x299   : > { %v2386_v14 = vmax.f32 %v2370_v58, 0.0  ;;  %v3591_v34 = vpop.f32.mrb[28].mxu0 }
 0x29a   : > { %v3665_v37 = vadd.f32 %v3664_v30, %v3591_v34  ;;  %v2323_v47 = vpop.f32.mrb[29].mxu0  ;;  %v2398_v45 = vpack.c.bf16 %v2388_v28, %v2387_v12 }
 0x29b   : > { %v3668_v40 = vadd.f32 %v4788_v31, %v2323_v47  ;;  %v3592_v61 = vpop.f32.mrb[30].mxu0  ;;  %v2397_v15 = vpack.c.bf16 %v2386_v14, %v2385_v33  ;;  %v3205_v14 = vld [vmem:[%s4124_s20 + $0x30] sm:$0xff]   ;;  %v3204_v47 = vld [vmem:[%s4124_s20 + $0x28] sm:$0xff]  }
 0x29c   : > { %v2375_v1 = vadd.f32 %v3665_v37, %v4797_v39  ;;  %v3671_v43 = vadd.f32 %v4792_v38, %v3592_v61  ;;  %v2326_v56 = vpop.f32.mrb[31].mxu0 }
 0x29d   : > { %v2373_v51 = vadd.f32 %v3668_v40, %v4797_v39  ;;  %v3674_v25 = vadd.f32 %v4790_v49, %v2326_v56  ;;  %3617 = vmatprep.mubr.bf16.mxu1 %v2397_v15  ;;  %v4833_v49 = vld [vmem:[%s4964_s6] ss:$0 sm:$0xff] }
 0x29e   : > { %v2376_v30 = vadd.f32 %v3671_v43, %v4797_v39  ;;  %3618 = vmatmul.mubr.bf16.gmra.mrb[76].mxu1 %v2398_v45  ;;  %v2391_v53 = vmax.f32 %v2375_v1, 0.0  ;;  %v3190_v1 = vunpack.c.l.bf16 %v3205_v14 }
 0x29f   : > { %v2374_v31 = vadd.f32 %v3674_v25, %v4797_v39  ;;  %v2389_v59 = vmax.f32 %v2373_v51, 0.0  ;;  %v3186_v25 = vunpack.c.l.bf16 %v3204_v47 }
 0x2a0   : > { %v2392_v54 = vmax.f32 %v2376_v30, 0.0 }
 0x2a1   : > { %v2390_v46 = vmax.f32 %v2374_v31, 0.0 }
 0x2a2   : > { %v2400_v44 = vpack.c.bf16 %v2392_v54, %v2391_v53  ;;  %v3191_v54 = vunpack.c.h.bf16 %v3205_v14 }
 0x2a3   : > { %v2399_v38 = vpack.c.bf16 %v2390_v46, %v2389_v59 }
 0x2a5   : > { %3621 = vmatprep.mubr.bf16.mxu1 %v2399_v38  ;;  %v3187_v38 = vunpack.c.h.bf16 %v3204_v47 }
 0x2a6   : > { %3622 = vmatmul.mubr.bf16.gmra.mrb[80].mxu1 %v2400_v44 }
 0x361   : > { %v3611_v39 = vpop.f32.mrb[68].mxu1 }
 0x362   : > { %v2551_v2 = vadd.f32 %v3611_v39, %v4833_v49  ;;  %v2542_v50 = vpop.f32.mrb[69].mxu1 }
 0x363   : > { %v2543_v5 = vadd.f32 %v4833_v49, %v2542_v50  ;;  %v3612_v57 = vpop.f32.mrb[70].mxu1 }
 0x364   : > { %v2607_v27 = vadd.f32 %v3174_v0, %v2551_v2  ;;  %v2554_v6 = vadd.f32 %v3612_v57, %v4833_v49  ;;  %v2545_v9 = vpop.f32.mrb[71].mxu1  ;;  %v3207_v2 = vld [vmem:[%s4124_s20 + $0x40] sm:$0xff]  }
 0x365   : > { %v2605_v10 = vadd.f32 %v3170_v36, %v2543_v5  ;;  %v2546_v8 = vadd.f32 %v4833_v49, %v2545_v9  ;;  %v3206_v5 = vld [vmem:[%s4124_s20 + $0x38] sm:$0xff]   ;;  %v3198_v9 = vunpack.c.l.bf16 %v3207_v2  ;;  %s2735_s20 = sshll.u32 %s4844_s16, 4  ;;  %s4896_s20 = int_to_ptr.vmem [resolvable:$true] %s2735_s20 }
 0x366   : > { %v2623_v16 = vmax.f32 %v2607_v27, 0.0  ;;  %v2608_v62 = vadd.f32 %v3175_v42, %v2554_v6  ;;  %s3902_s13 = scalar_lea.vmem %s4896_s20, 1024  ;;  %p3909_p5 = scmp.lt.s32.totalorder %s4896_s20, %s3907_s18 }
 0x367   : > { %v2621_v55 = vmax.f32 %v2605_v10, 0.0  ;;  %v2606_v17 = vadd.f32 %v3171_v24, %v2546_v8  ;;  %p3903_p1 = scmp.ne.s32.totalorder %s4896_s20, %s3902_s13  ;;  %p3910_p6 = scmp.lt.s32.totalorder %s3908_s27, %s3902_s13 }
 0x368   : > { %v3153_v23 = vpack.c.bf16 %v2623_v16, %v2623_v16  ;;  %v2624_v18 = vmax.f32 %v2608_v62, 0.0  ;;  %v3194_v16 = vunpack.c.l.bf16 %v3206_v5 }
 0x369   : > { %v3151_v7 = vpack.c.bf16 %v2621_v55, %v2621_v55  ;;  %v2622_v52 = vmax.f32 %v2606_v17, 0.0  ;;  %v3615_v29 = vpop.f32.mrb[72].mxu1  ;;  %v3199_v17 = vunpack.c.h.bf16 %v3207_v2  ;;  %p3904_p2 = pnand %p3903_p1, %p4092_p3  ;;  %p3911_p7 = por %p3910_p6, %p3909_p5 }
 0x36a   : > { %2704 = vst.msk [vmem:[%s4844_s16 + $0x8] sm:$0xf] %vm2701_vm1, %v3153_v23  ;;  %v3154_v3 = vpack.c.bf16 %v2624_v18, %v2624_v18  ;;  %v2567_v26 = vadd.f32 %v3615_v29, %v4833_v49  ;;  %v2558_v20 = vpop.f32.mrb[73].mxu1 }
 0x36b   : > { %2702 = vst.msk [vmem:[%s4844_s16] sm:$0xf] %vm2701_vm1, %v3151_v7  ;;  %v3152_v32 = vpack.c.bf16 %v2622_v52, %v2622_v52  ;;  %v2559_v22 = vadd.f32 %v4833_v49, %v2558_v20  ;;  %v3616_v48 = vpop.f32.mrb[74].mxu1  ;;  %v3195_v7 = vunpack.c.h.bf16 %v3206_v5  ;;  %p3905_p4 = pneg %p3904_p2 }
 0x36c   : > { %2705 = vst.msk [vmem:[%s4844_s16 + $0xc] sm:$0xf] %vm2701_vm1, %v3154_v3  ;;  %v2611_v41 = vadd.f32 %v3182_v4, %v2567_v26  ;;  %v2570_v58 = vadd.f32 %v3616_v48, %v4833_v49  ;;  %v2561_v12 = vpop.f32.mrb[75].mxu1 }
 0x36d   : > { %2703 = vst.msk [vmem:[%s4844_s16 + $0x4] sm:$0xf] %vm2701_vm1, %v3152_v32  ;;  %v2609_v28 = vadd.f32 %v3178_v11, %v2559_v22  ;;  %v2562_v33 = vadd.f32 %v4833_v49, %v2561_v12  ;;  %p3912_p9 = pnand %p3911_p7, %p3905_p4 }
 0x36e   : > { %v2627_v34 = vmax.f32 %v2611_v41, 0.0  ;;  %v2612_v37 = vadd.f32 %v3183_v19, %v2570_v58 }
 0x36f   : > { %v2625_v45 = vmax.f32 %v2609_v28, 0.0  ;;  %v2610_v40 = vadd.f32 %v3179_v21, %v2562_v33 }
 0x370   : > { %v3157_v61 = vpack.c.bf16 %v2627_v34, %v2627_v34  ;;  %v2628_v15 = vmax.f32 %v2612_v37, 0.0 }
 0x371   : > { %v3155_v43 = vpack.c.bf16 %v2625_v45, %v2625_v45  ;;  %v2626_v56 = vmax.f32 %v2610_v40, 0.0  ;;  %v3619_v51 = vpop.f32.mrb[76].mxu1 }
 0x372   : > { %2708 = vst.msk [vmem:[%s4844_s16 + $0x18] sm:$0xf] %vm2701_vm1, %v3157_v61  ;;  %v3158_v30 = vpack.c.bf16 %v2628_v15, %v2628_v15  ;;  %v2583_v31 = vadd.f32 %v3619_v51, %v4833_v49  ;;  %v2574_v53 = vpop.f32.mrb[77].mxu1 }
 0x373   : > { %2706 = vst.msk [vmem:[%s4844_s16 + $0x10] sm:$0xf] %vm2701_vm1, %v3155_v43  ;;  %v3156_v59 = vpack.c.bf16 %v2626_v56, %v2626_v56  ;;  %v2575_v46 = vadd.f32 %v4833_v49, %v2574_v53  ;;  %v3620_v44 = vpop.f32.mrb[78].mxu1 }
 0x374   : > { %2709 = vst.msk [vmem:[%s4844_s16 + $0x1c] sm:$0xf] %vm2701_vm1, %v3158_v30  ;;  %v2615_v60 = vadd.f32 %v3190_v1, %v2583_v31  ;;  %v2586_v63 = vadd.f32 %v3620_v44, %v4833_v49  ;;  %v2577_v0 = vpop.f32.mrb[79].mxu1 }
 0x375   : > { %2707 = vst.msk [vmem:[%s4844_s16 + $0x14] sm:$0xf] %vm2701_vm1, %v3156_v59  ;;  %v2613_v39 = vadd.f32 %v3186_v25, %v2575_v46  ;;  %v2578_v36 = vadd.f32 %v4833_v49, %v2577_v0 }
 0x376   : > { %v2631_v50 = vmax.f32 %v2615_v60, 0.0  ;;  %v2616_v42 = vadd.f32 %v3191_v54, %v2586_v63 }
 0x377   : > { %v2629_v57 = vmax.f32 %v2613_v39, 0.0  ;;  %v2614_v24 = vadd.f32 %v3187_v38, %v2578_v36 }
 0x378   : > { %v3161_v27 = vpack.c.bf16 %v2631_v50, %v2631_v50  ;;  %v2632_v6 = vmax.f32 %v2616_v42, 0.0 }
 0x379   : > { %v3159_v10 = vpack.c.bf16 %v2629_v57, %v2629_v57  ;;  %v2630_v8 = vmax.f32 %v2614_v24, 0.0  ;;  %v3623_v13 = vpop.f32.mrb[80].mxu1 }
 0x37a   : > { %2712 = vst.msk [vmem:[%s4844_s16 + $0x28] sm:$0xf] %vm2701_vm1, %v3161_v27  ;;  %v3162_v62 = vpack.c.bf16 %v2632_v6, %v2632_v6  ;;  %v2599_v35 = vadd.f32 %v3623_v13, %v4833_v49  ;;  %v2590_v55 = vpop.f32.mrb[81].mxu1 }
 0x37b   : > { %2710 = vst.msk [vmem:[%s4844_s16 + $0x20] sm:$0xf] %vm2701_vm1, %v3159_v10  ;;  %v3160_v23 = vpack.c.bf16 %v2630_v8, %v2630_v8  ;;  %v2591_v18 = vadd.f32 %v4833_v49, %v2590_v55  ;;  %v3624_v4 = vpop.f32.mrb[82].mxu1 }
 0x37c   : > { %2713 = vst.msk [vmem:[%s4844_s16 + $0x2c] sm:$0xf] %vm2701_vm1, %v3162_v62  ;;  %v2619_v52 = vadd.f32 %v3198_v9, %v2599_v35  ;;  %v2602_v29 = vadd.f32 %v3624_v4, %v4833_v49  ;;  %v2593_v11 = vpop.f32.mrb[83].mxu1 }
 0x37d   : > { %2711 = vst.msk [vmem:[%s4844_s16 + $0x24] sm:$0xf] %vm2701_vm1, %v3160_v23  ;;  %v2617_v3 = vadd.f32 %v3194_v16, %v2591_v18  ;;  %v2594_v26 = vadd.f32 %v4833_v49, %v2593_v11 }
 0x37e   : > { %v2635_v20 = vmax.f32 %v2619_v52, 0.0  ;;  %v2620_v19 = vadd.f32 %v3199_v17, %v2602_v29 }
 0x37f   : > { %v2633_v32 = vmax.f32 %v2617_v3, 0.0  ;;  %v2618_v22 = vadd.f32 %v3195_v7, %v2594_v26 }
 0x380   : > { %v3165_v48 = vpack.c.bf16 %v2635_v20, %v2635_v20  ;;  %v2636_v21 = vmax.f32 %v2620_v19, 0.0 }
 0x381   : > { %v3163_v41 = vpack.c.bf16 %v2633_v32, %v2633_v32  ;;  %v2634_v58 = vmax.f32 %v2618_v22, 0.0 }
 0x382   : > { %2716 = vst.msk [vmem:[%s4844_s16 + $0x38] sm:$0xf] %vm2701_vm1, %v3165_v48  ;;  %v3166_v12 = vpack.c.bf16 %v2636_v21, %v2636_v21 }
 0x383   : > { %2714 = vst.msk [vmem:[%s4844_s16 + $0x30] sm:$0xf] %vm2701_vm1, %v3163_v41  ;;  %v3164_v49 = vpack.c.bf16 %v2634_v58, %v2634_v58 }
 0x384   : > { %2717 = vst.msk [vmem:[%s4844_s16 + $0x3c] sm:$0xf] %vm2701_vm1, %v3166_v12 }
 0x385   : > { %2715 = vst.msk [vmem:[%s4844_s16 + $0x34] sm:$0xf] %vm2701_vm1, %v3164_v49 }
 0x386   : > { %3915 = shalt.err (!%p3912_p9)
}
 0x387   : > { %s3916_s10 = scalar_lea.hbm %s4894_s23, 1024  ;;  %s3920_s21 = scalar_lea.hbm %s4965_s7, 4096 }
 0x388   : > { %p3917_p10 = scmp.ne.s32.totalorder %s4894_s23, %s3916_s10  ;;  %p3921_p13 = scmp.lt.u32.totalorder %s4894_s23, %s4965_s7 }
 0x389   : > { %p3922_p0 = scmp.lt.u32.totalorder %s3920_s21, %s3916_s10  ;;  %p3924_p2 = scmp.lt.u32.totalorder %s3916_s10, %s4894_s23 }
 0x38a   : > { %p3918_p11 = pnand %p3917_p10, %p4092_p3 }
 0x38b   : > { %p3923_p1 = por %p3922_p0, %p3921_p13 }
 0x38c   : > { %p3919_p12 = pneg %p3918_p11 }
 0x38d   : > { %p3925_p4 = por %p3924_p2, %p3923_p1 }
 0x38f   : > { %p3926_p5 = pnand %p3925_p4, %p3919_p12 }
 0x391   : > { %3929 = shalt.err (!%p3926_p5)
}
 0x392   : > { %s3999_s13 = smov 64   ;;  %s4000_s18 = smov 4  }
 0x393   : > { %3708 = dma.vmem_to_hbm [thread:$0]  (%p4092_p3), %s4896_s20, 1024, %s4894_s23, %s4906_s9, %s3999_s13, %s3999_s13, %s4000_s18  }
 0x394 PF: > { %p3714_p6 = scmp.ge.s32.totalorder %s3996_s8, 2  ;;  %s2750_s27 = sand.u32 1, %s3968_s24  }
 0x395   : > { %s2751_s10 = scalar_lea.sflag [#allocation4], %s2750_s27 }
 0x396   : > { %p3711_p7 = pnand %p3714_p6, %p4101_p8 }
 0x398   : > { %3963 = dma.done.wait (!%p3711_p7), %s2751_s10, 1024  }
 0x399   : > { %3965 = vsyncadd (!%p3711_p7), %s2751_s10, 4294966272  ;;  %s20_s8 = sadd.s32 1, %s3996_s8   ;;  %s4980_s24 = smov %s3972_s25 }
 0x39a   : > { %p17_p9 = scmp.ge.s32.totalorder %s20_s8, 6   ;;  %s4981_s25 = smov %s3976_s26 }
 0x39b   : > { %s4982_s26 = smov %s4110_s19  ;;  %s4983_s27 = smov %s3988_s29 }
 0x39c   : > { %s4984_s28 = smov %s3992_s30  ;;  %s4985_s29 = smov %s4988_s11 }
 0x39d   : > { %s4986_s30 = smov %s4992_s12  ;;  %19 = sbr.rel (!%p17_p9) target bundleno = 5 (0x5), region = 87 }
 0x3a4   :  { %2756 = vsyncpa [#allocation4], 1 }
 0x3a5   :  { %2758 = vsyncpa [#allocation4 + $0x1], 1 }

</bundles_post_ra>
